<compile_context>
chip_gen: v7x
topology: tpu7x:2x2x1
jax: 0.10.0
libtpu: 0.0.40
codegen_flags: <defaults>
</compile_context>

<pallas_src>
import jax
import jax.numpy as jnp
from jax.experimental import pallas as pl
from jax.experimental.pallas import tpu as pltpu

N_NEURONS = 64        # module-level constant in the reference file
INPUT_DIM = 3         # nn default: x(1) + alpha(1) + x_co(1)
OUTPUT_DIM = 1        # nn default
HIDDEN_PAD = 128      # lane-dense padded hidden width


def _mlp_kernel(x_ref, a_ref, c_ref, w10_ref, w11_ref, w12_ref, b1_ref,
                w2_ref, b2_ref, w3_ref, b3_ref, o_ref):
    """One batch tile (batch on lanes): 3 FMAs -> SiLU -> MXU -> SiLU -> out."""
    x = x_ref[...]            # (1, tb)
    a = a_ref[...]            # (1, tb)
    c = c_ref[...]            # (1, tb)

    # Layer 1: K=3 contraction as three broadcast multiply-adds on the VPU.
    # (Hp, 1) * (1, tb) outer-product broadcasts -> (Hp, tb)
    h = w10_ref[...] * x + w11_ref[...] * a + w12_ref[...] * c + b1_ref[...]
    h = h * jax.nn.sigmoid(h)                                     # SiLU

    # Layer 2 on the MXU: (Hp, Hp) @ (Hp, tb) -> (Hp, tb)
    h = jnp.dot(w2_ref[...], h, preferred_element_type=jnp.float32) + b2_ref[...]
    h = h * jax.nn.sigmoid(h)                                     # SiLU

    # Output layer: (out_dim, Hp) @ (Hp, tb) -> (out_dim, tb), lane-dense store.
    out = jnp.dot(w3_ref[...], h, preferred_element_type=jnp.float32) + b3_ref[...]
    o_ref[...] = out.astype(o_ref.dtype)


def prepare_params(params):
    """One-time parameter prep: transpose, pad hidden dim to a lane-dense 128.

    params = (w1, b1, w2, b2, w3, b3) with
      w1: (input_dim, H), b1: (H,)
      w2: (H, H),         b2: (H,)
      w3: (H, out_dim),   b3: (out_dim,)
    Padding is exact: padded hidden units see 0*x + 0 bias -> SiLU(0) = 0.
    """
    w1, b1, w2, b2, w3, b3 = [jnp.asarray(p, jnp.float32) for p in params]
    d_in, hidden = w1.shape
    out_dim = w3.shape[1]
    assert d_in == 3, "NN_cond_simpler concatenates exactly three 1-feature inputs"
    hp = ((hidden + HIDDEN_PAD - 1) // HIDDEN_PAD) * HIDDEN_PAD

    # Layer-1 weight columns as (Hp, 1) column vectors (one per input feature).
    w1t = jnp.zeros((hp, d_in), jnp.float32).at[:hidden, :].set(w1.T)
    w10 = w1t[:, 0:1]
    w11 = w1t[:, 1:2]
    w12 = w1t[:, 2:3]
    b1c = jnp.zeros((hp, 1), jnp.float32).at[:hidden, 0].set(b1)

    w2t = jnp.zeros((hp, hp), jnp.float32).at[:hidden, :hidden].set(w2.T)
    b2c = jnp.zeros((hp, 1), jnp.float32).at[:hidden, 0].set(b2)

    w3t = jnp.zeros((out_dim, hp), jnp.float32).at[:, :hidden].set(w3.T)
    b3c = b3.reshape(out_dim, 1)
    return (w10, w11, w12, b1c, w2t, b2c, w3t, b3c)


def nn_cond_simpler_forward(x, alpha, x_co, prepared, *, tb=1024):
    """Pallas forward pass of NN_cond_simpler.

    x, alpha, x_co: (B, 1) float32 (or (B,))
    prepared: output of prepare_params(...)
    returns (B, out_dim) float32
    """
    assert tb % 128 == 0, "batch tile must be a multiple of 128 lanes"
    w10, w11, w12, b1c, w2t, b2c, w3t, b3c = prepared
    hp = w2t.shape[0]
    out_dim = w3t.shape[0]

    B = x.shape[0]
    # Transposed row-vector views (layout-only reshapes, no concatenate).
    xr = x.reshape(1, -1).astype(jnp.float32)
    ar = alpha.reshape(1, -1).astype(jnp.float32)
    cr = x_co.reshape(1, -1).astype(jnp.float32)

    n_tiles = pl.cdiv(B, tb)
    Bp = n_tiles * tb
    if Bp != B:
        pad = ((0, 0), (0, Bp - B))
        xr = jnp.pad(xr, pad)
        ar = jnp.pad(ar, pad)
        cr = jnp.pad(cr, pad)

    batch_spec = pl.BlockSpec((1, tb), lambda i: (0, i))
    const = lambda shape: pl.BlockSpec(shape, lambda i: (0, 0))  # resident block

    out_t = pl.pallas_call(
        _mlp_kernel,
        out_shape=jax.ShapeDtypeStruct((out_dim, Bp), jnp.float32),
        grid_spec=pltpu.PrefetchScalarGridSpec(
            num_scalar_prefetch=0,
            grid=(n_tiles,),
            in_specs=[
                batch_spec,               # x   (1, tb)
                batch_spec,               # alpha
                batch_spec,               # x_co
                const((hp, 1)),           # W1 column 0
                const((hp, 1)),           # W1 column 1
                const((hp, 1)),           # W1 column 2
                const((hp, 1)),           # b1
                const((hp, hp)),          # W2^T
                const((hp, 1)),           # b2
                const((out_dim, hp)),     # W3^T
                const((out_dim, 1)),      # b3
            ],
            out_specs=pl.BlockSpec((out_dim, tb), lambda i: (0, i)),
        ),
        compiler_params=pltpu.CompilerParams(
            dimension_semantics=("parallel",),
        ),
    )(xr, ar, cr, w10, w11, w12, b1c, w2t, b2c, w3t, b3c)

    # Strip batch padding and return in the reference (B, out_dim) layout.
    return out_t[:, :B].T


def _reference_forward(x, alpha, x_co, params):
    """Pure-JAX reference mirroring the PyTorch forward."""
    w1, b1, w2, b2, w3, b3 = params
    r = jnp.concatenate([x, alpha, x_co], axis=1)
    r = r @ w1 + b1
    r = r * jax.nn.sigmoid(r)
    r = r @ w2 + b2
    r = r * jax.nn.sigmoid(r)
    return r @ w3 + b3


if __name__ == "__main__":
    key = jax.random.PRNGKey(0)
    (k_x, k_a, k_c, k_w1, k_b1, k_w2, k_b2, k_w3, k_b3) = jax.random.split(key, 9)

    # Small shapes consistent with the module defaults: input_dim = 1+1+1 = 3.
    B = 1000                      # deliberately NOT a multiple of the tile
    hidden = N_NEURONS            # 64
    out_dim = OUTPUT_DIM          # 1

    x = jax.random.normal(k_x, (B, 1), dtype=jnp.float32)
    alpha = jax.random.normal(k_a, (B, 1), dtype=jnp.float32)
    x_co = jax.random.normal(k_c, (B, 1), dtype=jnp.float32)

    # Deterministic parameter init (uniform, same bounds as torch.nn.Linear default).
    lim1 = 1.0 / (INPUT_DIM ** 0.5)
    lim2 = 1.0 / (hidden ** 0.5)
    w1 = jax.random.uniform(k_w1, (INPUT_DIM, hidden), jnp.float32, -lim1, lim1)
    b1 = jax.random.uniform(k_b1, (hidden,), jnp.float32, -lim1, lim1)
    w2 = jax.random.uniform(k_w2, (hidden, hidden), jnp.float32, -lim2, lim2)
    b2 = jax.random.uniform(k_b2, (hidden,), jnp.float32, -lim2, lim2)
    w3 = jax.random.uniform(k_w3, (hidden, out_dim), jnp.float32, -lim2, lim2)
    b3 = jax.random.uniform(k_b3, (out_dim,), jnp.float32, -lim2, lim2)

    params = (w1, b1, w2, b2, w3, b3)
    prepared = prepare_params(params)     # one-time: transpose + pad hidden to 128

    # tb=512 -> grid of 2 parallel steps (pads B 1000 -> 1024): both v7x TCs
    # get work, and only 2 steps of pipeline overhead on single-TC v5e/v6e.
    out = nn_cond_simpler_forward(x, alpha, x_co, prepared, tb=512)
    out = jax.block_until_ready(out)

    ref = _reference_forward(x, alpha, x_co, params)
    assert out.shape == (B, out_dim)
    assert jnp.allclose(out, ref, atol=1e-5, rtol=1e-5), "mismatch vs JAX reference"

    print("KERNEL_OK")
</pallas_src>

<mosaic_0001>
module attributes {stable_mosaic.version = 11 : i64} {
  func.func @_mlp_kernel(%arg0: i32, %arg1: memref<1x512xf32, #tpu.memory_space<vmem>>, %arg2: memref<1x512xf32, #tpu.memory_space<vmem>>, %arg3: memref<1x512xf32, #tpu.memory_space<vmem>>, %arg4: memref<128x1xf32, #tpu.memory_space<vmem>>, %arg5: memref<128x1xf32, #tpu.memory_space<vmem>>, %arg6: memref<128x1xf32, #tpu.memory_space<vmem>>, %arg7: memref<128x1xf32, #tpu.memory_space<vmem>>, %arg8: memref<128x128xf32, #tpu.memory_space<vmem>>, %arg9: memref<128x1xf32, #tpu.memory_space<vmem>>, %arg10: memref<1x128xf32, #tpu.memory_space<vmem>>, %arg11: memref<1x1xf32, #tpu.memory_space<vmem>>, %arg12: memref<1x512xf32, #tpu.memory_space<vmem>>) attributes {dimension_semantics = [#tpu.dimension_semantics<parallel>], iteration_bounds = array<i64: 2>, scalar_prefetch = 0 : i64, scratch_operands = 0 : i64, tpu.core_type = #tpu.core_type<tc>, window_params = [{transform_indices = @transform_0, window_bounds = array<i64: 1, 512>}, {transform_indices = @transform_1, window_bounds = array<i64: 1, 512>}, {transform_indices = @transform_2, window_bounds = array<i64: 1, 512>}, {pipeline_mode = #tpu.pipeline_mode<synchronous>, transform_indices = @transform_3, window_bounds = array<i64: 128, 1>}, {pipeline_mode = #tpu.pipeline_mode<synchronous>, transform_indices = @transform_4, window_bounds = array<i64: 128, 1>}, {pipeline_mode = #tpu.pipeline_mode<synchronous>, transform_indices = @transform_5, window_bounds = array<i64: 128, 1>}, {pipeline_mode = #tpu.pipeline_mode<synchronous>, transform_indices = @transform_6, window_bounds = array<i64: 128, 1>}, {pipeline_mode = #tpu.pipeline_mode<synchronous>, transform_indices = @transform_7, window_bounds = array<i64: 128, 128>}, {pipeline_mode = #tpu.pipeline_mode<synchronous>, transform_indices = @transform_8, window_bounds = array<i64: 128, 1>}, {pipeline_mode = #tpu.pipeline_mode<synchronous>, transform_indices = @transform_9, window_bounds = array<i64: 1, 128>}, {pipeline_mode = #tpu.pipeline_mode<synchronous>, transform_indices = @transform_10, window_bounds = array<i64: 1, 1>}, {transform_indices = @transform_11, window_bounds = array<i64: 1, 512>}]} {
    %c0 = arith.constant 0 : index
    %c0_0 = arith.constant 0 : index
    %0 = vector.load %arg1[%c0, %c0_0] : memref<1x512xf32, #tpu.memory_space<vmem>>, vector<1x512xf32>
    %c0_1 = arith.constant 0 : index
    %c0_2 = arith.constant 0 : index
    %1 = vector.load %arg2[%c0_1, %c0_2] : memref<1x512xf32, #tpu.memory_space<vmem>>, vector<1x512xf32>
    %c0_3 = arith.constant 0 : index
    %c0_4 = arith.constant 0 : index
    %2 = vector.load %arg3[%c0_3, %c0_4] : memref<1x512xf32, #tpu.memory_space<vmem>>, vector<1x512xf32>
    %c0_5 = arith.constant 0 : index
    %c0_6 = arith.constant 0 : index
    %3 = vector.load %arg4[%c0_5, %c0_6] : memref<128x1xf32, #tpu.memory_space<vmem>>, vector<128x1xf32>
    %4 = vector.broadcast %3 : vector<128x1xf32> to vector<128x512xf32>
    %5 = vector.broadcast %0 : vector<1x512xf32> to vector<128x512xf32>
    %6 = arith.mulf %4, %5 : vector<128x512xf32>
    %c0_7 = arith.constant 0 : index
    %c0_8 = arith.constant 0 : index
    %7 = vector.load %arg5[%c0_7, %c0_8] : memref<128x1xf32, #tpu.memory_space<vmem>>, vector<128x1xf32>
    %8 = vector.broadcast %7 : vector<128x1xf32> to vector<128x512xf32>
    %9 = vector.broadcast %1 : vector<1x512xf32> to vector<128x512xf32>
    %10 = arith.mulf %8, %9 : vector<128x512xf32>
    %11 = arith.addf %6, %10 : vector<128x512xf32>
    %c0_9 = arith.constant 0 : index
    %c0_10 = arith.constant 0 : index
    %12 = vector.load %arg6[%c0_9, %c0_10] : memref<128x1xf32, #tpu.memory_space<vmem>>, vector<128x1xf32>
    %13 = vector.broadcast %12 : vector<128x1xf32> to vector<128x512xf32>
    %14 = vector.broadcast %2 : vector<1x512xf32> to vector<128x512xf32>
    %15 = arith.mulf %13, %14 : vector<128x512xf32>
    %16 = arith.addf %11, %15 : vector<128x512xf32>
    %c0_11 = arith.constant 0 : index
    %c0_12 = arith.constant 0 : index
    %17 = vector.load %arg7[%c0_11, %c0_12] : memref<128x1xf32, #tpu.memory_space<vmem>>, vector<128x1xf32>
    %18 = vector.broadcast %17 : vector<128x1xf32> to vector<128x512xf32>
    %19 = arith.addf %16, %18 : vector<128x512xf32>
    %20 = arith.negf %19 : vector<128x512xf32>
    %21 = math.exp %20 : vector<128x512xf32>
    %cst = arith.constant 1.000000e+00 : f32
    %22 = vector.broadcast %cst : f32 to vector<128x512xf32>
    %23 = arith.addf %22, %21 : vector<128x512xf32>
    %24 = arith.divf %22, %23 : vector<128x512xf32>
    %25 = arith.mulf %19, %24 : vector<128x512xf32>
    %c0_13 = arith.constant 0 : index
    %c0_14 = arith.constant 0 : index
    %26 = vector.load %arg8[%c0_13, %c0_14] : memref<128x128xf32, #tpu.memory_space<vmem>>, vector<128x128xf32>
    %cst_15 = arith.constant dense<0.000000e+00> : vector<128x512xf32>
    %27 = tpu.matmul %26, %25, %cst_15 {dimension_numbers = #tpu.dot_dimension_numbers<[1], [0], [0], [1], [0, 0, 1, 1], [], []>} : vector<128x128xf32>, vector<128x512xf32>, vector<128x512xf32> -> vector<128x512xf32>
    %c0_16 = arith.constant 0 : index
    %c0_17 = arith.constant 0 : index
    %28 = vector.load %arg9[%c0_16, %c0_17] : memref<128x1xf32, #tpu.memory_space<vmem>>, vector<128x1xf32>
    %29 = vector.broadcast %28 : vector<128x1xf32> to vector<128x512xf32>
    %30 = arith.addf %27, %29 : vector<128x512xf32>
    %31 = arith.negf %30 : vector<128x512xf32>
    %32 = math.exp %31 : vector<128x512xf32>
    %cst_18 = arith.constant 1.000000e+00 : f32
    %33 = vector.broadcast %cst_18 : f32 to vector<128x512xf32>
    %34 = arith.addf %33, %32 : vector<128x512xf32>
    %35 = arith.divf %33, %34 : vector<128x512xf32>
    %36 = arith.mulf %30, %35 : vector<128x512xf32>
    %c0_19 = arith.constant 0 : index
    %c0_20 = arith.constant 0 : index
    %37 = vector.load %arg10[%c0_19, %c0_20] : memref<1x128xf32, #tpu.memory_space<vmem>>, vector<1x128xf32>
    %cst_21 = arith.constant dense<0.000000e+00> : vector<1x512xf32>
    %38 = tpu.matmul %37, %36, %cst_21 {dimension_numbers = #tpu.dot_dimension_numbers<[1], [0], [0], [1], [0, 0, 1, 1], [], []>} : vector<1x128xf32>, vector<128x512xf32>, vector<1x512xf32> -> vector<1x512xf32>
    %c0_22 = arith.constant 0 : index
    %c0_23 = arith.constant 0 : index
    %39 = vector.load %arg11[%c0_22, %c0_23] : memref<1x1xf32, #tpu.memory_space<vmem>>, vector<1x1xf32>
    %40 = vector.broadcast %39 : vector<1x1xf32> to vector<1x512xf32>
    %41 = arith.addf %38, %40 : vector<1x512xf32>
    %c0_24 = arith.constant 0 : index
    %c0_25 = arith.constant 0 : index
    %42 = vector.load %arg12[%c0_24, %c0_25] : memref<1x512xf32, #tpu.memory_space<vmem>>, vector<1x512xf32>
    tpu.vector_store %arg12[%c0_24, %c0_25], %41 {strides = array<i32>} : memref<1x512xf32, #tpu.memory_space<vmem>>, vector<1x512xf32>,
    return
  }
  func.func @transform_0(%arg0: i32) -> (i32, i32) {
    %c0_i32 = arith.constant 0 : i32
    %c0_i32_0 = arith.constant 0 : i32
    return %c0_i32, %arg0 : i32, i32
  }
  func.func @transform_1(%arg0: i32) -> (i32, i32) {
    %c0_i32 = arith.constant 0 : i32
    %c0_i32_0 = arith.constant 0 : i32
    return %c0_i32, %arg0 : i32, i32
  }
  func.func @transform_2(%arg0: i32) -> (i32, i32) {
    %c0_i32 = arith.constant 0 : i32
    %c0_i32_0 = arith.constant 0 : i32
    return %c0_i32, %arg0 : i32, i32
  }
  func.func @transform_3(%arg0: i32) -> (i32, i32) {
    %c0_i32 = arith.constant 0 : i32
    %c0_i32_0 = arith.constant 0 : i32
    %c0_i32_1 = arith.constant 0 : i32
    return %c0_i32, %c0_i32_0 : i32, i32
  }
  func.func @transform_4(%arg0: i32) -> (i32, i32) {
    %c0_i32 = arith.constant 0 : i32
    %c0_i32_0 = arith.constant 0 : i32
    %c0_i32_1 = arith.constant 0 : i32
    return %c0_i32, %c0_i32_0 : i32, i32
  }
  func.func @transform_5(%arg0: i32) -> (i32, i32) {
    %c0_i32 = arith.constant 0 : i32
    %c0_i32_0 = arith.constant 0 : i32
    %c0_i32_1 = arith.constant 0 : i32
    return %c0_i32, %c0_i32_0 : i32, i32
  }
  func.func @transform_6(%arg0: i32) -> (i32, i32) {
    %c0_i32 = arith.constant 0 : i32
    %c0_i32_0 = arith.constant 0 : i32
    %c0_i32_1 = arith.constant 0 : i32
    return %c0_i32, %c0_i32_0 : i32, i32
  }
  func.func @transform_7(%arg0: i32) -> (i32, i32) {
    %c0_i32 = arith.constant 0 : i32
    %c0_i32_0 = arith.constant 0 : i32
    %c0_i32_1 = arith.constant 0 : i32
    return %c0_i32, %c0_i32_0 : i32, i32
  }
  func.func @transform_8(%arg0: i32) -> (i32, i32) {
    %c0_i32 = arith.constant 0 : i32
    %c0_i32_0 = arith.constant 0 : i32
    %c0_i32_1 = arith.constant 0 : i32
    return %c0_i32, %c0_i32_0 : i32, i32
  }
  func.func @transform_9(%arg0: i32) -> (i32, i32) {
    %c0_i32 = arith.constant 0 : i32
    %c0_i32_0 = arith.constant 0 : i32
    %c0_i32_1 = arith.constant 0 : i32
    return %c0_i32, %c0_i32_0 : i32, i32
  }
  func.func @transform_10(%arg0: i32) -> (i32, i32) {
    %c0_i32 = arith.constant 0 : i32
    %c0_i32_0 = arith.constant 0 : i32
    %c0_i32_1 = arith.constant 0 : i32
    return %c0_i32, %c0_i32_0 : i32, i32
  }
  func.func @transform_11(%arg0: i32) -> (i32, i32) {
    %c0_i32 = arith.constant 0 : i32
    %c0_i32_0 = arith.constant 0 : i32
    return %c0_i32, %arg0 : i32, i32
  }
}

</mosaic_0001>

<bundles_post_ra>
// kernel: tpu_custom_call.1
= control target key start
LH: loop header
LB: loop body
LE: loop exit
PB: predicated region body
PF: predicated region fallthrough
CT: control target
= control target key end

     0   :  { %s5670_s0 = inlined_call_operand.vmem [shape: f32[1,1024], index: 0, kind: input, shape index: {}]   ;;  %s5671_s1 = inlined_call_operand.vmem [shape: f32[1,1024], index: 1, kind: input, shape index: {}]   ;;  %s5672_s2 = inlined_call_operand.vmem [shape: f32[1,1024], index: 2, kind: input, shape index: {}]   ;;  %s5673_s3 = inlined_call_operand.vmem [shape: f32[128,1], index: 3, kind: input, shape index: {}]   ;;  %s5674_s4 = inlined_call_operand.vmem [shape: f32[128,1], index: 4, kind: input, shape index: {}]   ;;  %s5675_s5 = inlined_call_operand.vmem [shape: f32[128,1], index: 5, kind: input, shape index: {}]   ;;  %s5676_s6 = inlined_call_operand.vmem [shape: f32[128,1], index: 6, kind: input, shape index: {}]   ;;  %s5677_s7 = inlined_call_operand.vmem [shape: f32[128,128], index: 7, kind: input, shape index: {}]   ;;  %s5678_s8 = inlined_call_operand.vmem [shape: f32[128,1], index: 8, kind: input, shape index: {}]   ;;  %s5679_s9 = inlined_call_operand.vmem [shape: f32[1,128], index: 9, kind: input, shape index: {}]   ;;  %s5680_s10 = inlined_call_operand.<no memory space> [shape: f32[1,1], index: 10, kind: input, shape index: {}]   ;;  %s5681_s11 = inlined_call_operand.hbm [shape: f32[1,1024], index: 11, kind: output, shape index: {}]  }
   0x1   :  { %5748 = sst [smem:[#allocation44_spill]] %s5673_s3  ;;  %v16_v0 = vstv %s5680_s10 }
   0x2   :  { %17 = vst [vmem:[#allocation2] sm:$0x1] %v16_v0 }
   0x3   :  { %18 = vsyncpa [#allocation4], 0 }
   0x4   :  { %20 = vsyncpa [#allocation4 + $0x1], 0  ;;  %s3822_s19 = smov 0   ;;  %s3824_s20 = smov 0  }
   0x5   :  { %s3826_s21 = smov 0   ;;  %s3828_s22 = smov 0  }
   0x6 LB: > { %s3843_s10 = sadd.s32 4294967295, %s3753_s22   ;;  %s2865_s23 = sadd.s32 4294967294, %s3753_s22   ;;  %s3753_s22 = sphi %s3828_s22, %s5889_s22   ;;  %s3749_s21 = sphi %s3826_s21, %s5888_s21   ;;  %s3745_s20 = sphi %s3824_s20, %s5887_s20   ;;  %s3741_s19 = sphi %s3822_s19, %s5886_s19  }
   0x7   : > { %s3847_s24 = sadd.s32 1, %s3753_s22   ;;  %s279_s25 = sadd.s32 1, %s3749_s21 }
   0x8   : > { %s276_s26 = ssub.s32 %s3753_s22, %s3847_s24  ;;  %p289_p0 = scmp.ne.s32.totalorder %s3749_s21, %s3745_s20 }
   0x9   : > { %p277_p1 = scmp.eq.s32.totalorder %s276_s26, 0  ;;  %p290_p2 = scmp.eq.s32.totalorder %s3843_s10, 1 }
   0xa   : > { %p295_p3 = scmp.ne.s32.totalorder %s3745_s20, %s3741_s19  ;;  %p296_p4 = scmp.eq.s32.totalorder %s2865_s23, 1 }
   0xb   : > { %s3858_s27 = scalar_select %p277_p1, %s3749_s21, %s279_s25  }
   0xc   : > { %p3860_p5 = por %p290_p2, %p289_p0  ;;  %p3864_p6 = por %p296_p4, %p295_p3 }
   0xd   : > { %p2868_p7 = scmp.ge.s32.totalorder %s3753_s22, 1  ;;  %p362_p8 = scmp.lt.s32.totalorder %s3753_s22, 3 }
   0xf   : > { %p363_p9 = pnand %p2868_p7, %p362_p8 }
  0x11   : > { %366 = sbr.rel (%p363_p9) target bundleno = 971 (0x3cb), region = 64 }
  0x18   : > { %v609_v1 = vld [vmem:[%s5674_s4] sm:$0xff]  ;;  %s5751_s3 = sld [smem:[#allocation44_spill]]  ;;  %v3755_v3 = vmov 0   ;;  %v610_v4 = vld [vmem:[%s5674_s4 + $0x8] sm:$0xff]  ;;  %v612_v10 = vld [vmem:[%s5674_s4 + $0x18] sm:$0xff]  ;;  %s2870_s26 = sshll.u32 %s3843_s10, 2  ;;  %v5682_v0 = vlaneseq }
  0x19   : > { %3178 = vset.pattern.permute.xlu1 %v3755_v3  ;;  %3177 = vset.pattern.permute.xlu0 %v3755_v3  ;;  %v855_v6 = vld [vmem:[%s5675_s5 + $0x8] sm:$0xff]  ;;  %v854_v7 = vld [vmem:[%s5675_s5] sm:$0xff]  ;;  %v611_v11 = vld [vmem:[%s5674_s4 + $0x10] sm:$0xff]  ;;  %p410_p10 = scmp.lt.s32.totalorder %s2870_s26, 7 }
  0x1a   : > { %627 = vperm.xlu1 %3178, %v609_v1   ;;  %v857_v12 = vld [vmem:[%s5675_s5 + $0x18] sm:$0xff]  ;;  %v856_v13 = vld [vmem:[%s5675_s5 + $0x10] sm:$0xff]  ;;  %v1100_v14 = vld [vmem:[%s5676_s6 + $0x8] sm:$0xff]  ;;  %v4064_v3 = vshrl.u32 %v5682_v0, 7 }
  0x1b   : > { %v1099_v15 = vld [vmem:[%s5676_s6] sm:$0xff]  ;;  %v614_v18 = vld [vmem:[%s5674_s4 + $0x28] sm:$0xff]  ;;  %v1102_v22 = vld [vmem:[%s5676_s6 + $0x18] sm:$0xff]  ;;  %s5891_s26 = smov (!%p410_p10, %s2870_s26), 7 }
  0x1c   : > { %v613_v19 = vld [vmem:[%s5674_s4 + $0x20] sm:$0xff]  ;;  %v859_v20 = vld [vmem:[%s5675_s5 + $0x28] sm:$0xff]  ;;  %v1101_v23 = vld [vmem:[%s5676_s6 + $0x10] sm:$0xff]  ;;  %5752 = vst [vmem:[#allocation6_spill] sm:$0xff] %v4064_v3  ;;  %s417_s30 = scalar_lea.vmem %s5671_s1, %s5891_s26  ;;  %s412_s14 = scalar_lea.vmem %s5670_s0, %s5891_s26 }
  0x1d   : > { %v858_v21 = vld [vmem:[%s5675_s5 + $0x20] sm:$0xff]  ;;  %v616_v26 = vld [vmem:[%s5674_s4 + $0x38] sm:$0xff]  ;;  %v615_v27 = vld [vmem:[%s5674_s4 + $0x30] sm:$0xff] }
  0x1e   : > { %v428_v2 = vld [vmem:[%s5751_s3] sm:$0xff]  ;;  %v429_v5 = vld [vmem:[%s5751_s3 + $0x8] sm:$0xff]  ;;  %632 = vperm.xlu1 %3178, %v610_v4   ;;  %v431_v8 = vld [vmem:[%s5751_s3 + $0x18] sm:$0xff] }
  0x1f   : > { %446 = vperm.xlu0 %3177, %v428_v2   ;;  %v430_v9 = vld [vmem:[%s5751_s3 + $0x10] sm:$0xff]  ;;  %v433_v16 = vld [vmem:[%s5751_s3 + $0x28] sm:$0xff]  ;;  %v432_v17 = vld [vmem:[%s5751_s3 + $0x20] sm:$0xff] }
  0x20   : > { %v435_v24 = vld [vmem:[%s5751_s3 + $0x38] sm:$0xff]  ;;  %v434_v25 = vld [vmem:[%s5751_s3 + $0x30] sm:$0xff]  ;;  %v1104_v30 = vld [vmem:[%s5676_s6 + $0x28] sm:$0xff] }
  0x21   : > { %v861_v28 = vld [vmem:[%s5675_s5 + $0x38] sm:$0xff]  ;;  %v860_v29 = vld [vmem:[%s5675_s5 + $0x30] sm:$0xff]  ;;  %v1103_v31 = vld [vmem:[%s5676_s6 + $0x20] sm:$0xff] }
  0x22   : > { %877 = vperm.xlu1 %3178, %v855_v6   ;;  %v437_v32 = vld [vmem:[%s5751_s3 + $0x48] sm:$0xff]  ;;  %v436_v33 = vld [vmem:[%s5751_s3 + $0x40] sm:$0xff]  ;;  %v1106_v38 = vld [vmem:[%s5676_s6 + $0x38] sm:$0xff]  ;;  %v531_v6 = vsub.s32 1, %v4064_v3 }
  0x23   : > { %451 = vperm.xlu0 %3177, %v429_v5   ;;  %v618_v34 = vld [vmem:[%s5674_s4 + $0x48] sm:$0xff]  ;;  %v617_v35 = vld [vmem:[%s5674_s4 + $0x40] sm:$0xff]  ;;  %v1105_v39 = vld [vmem:[%s5676_s6 + $0x30] sm:$0xff]  ;;  %v4076_v5 = vsub.s32 0, %v4064_v3 }
  0x24   : > { %v863_v36 = vld [vmem:[%s5675_s5 + $0x48] sm:$0xff]  ;;  %v862_v37 = vld [vmem:[%s5675_s5 + $0x40] sm:$0xff]  ;;  %v439_v40 = vld [vmem:[%s5751_s3 + $0x58] sm:$0xff] }
  0x25   : > { %v438_v41 = vld [vmem:[%s5751_s3 + $0x50] sm:$0xff]  ;;  %v620_v42 = vld [vmem:[%s5674_s4 + $0x58] sm:$0xff]  ;;  %v1108_v46 = vld [vmem:[%s5676_s6 + $0x48] sm:$0xff]  ;;  %5753 = vst [vmem:[#allocation7_spill] sm:$0xff] %v4076_v5 }
  0x26   : > { %461 = vperm.xlu1 %3178, %v431_v8   ;;  %v619_v43 = vld [vmem:[%s5674_s4 + $0x50] sm:$0xff]  ;;  %v865_v44 = vld [vmem:[%s5675_s5 + $0x58] sm:$0xff]  ;;  %v1107_v47 = vld [vmem:[%s5676_s6 + $0x40] sm:$0xff] }
  0x27   : > { %872 = vperm.xlu0 %3177, %v854_v7   ;;  %v864_v45 = vld [vmem:[%s5675_s5 + $0x50] sm:$0xff]  ;;  %v441_v48 = vld [vmem:[%s5751_s3 + $0x68] sm:$0xff]  ;;  %v440_v49 = vld [vmem:[%s5751_s3 + $0x60] sm:$0xff]  ;;  %v535_v7 = vsub.s32 2, %v4064_v3 }
  0x28   : > { %v622_v50 = vld [vmem:[%s5674_s4 + $0x68] sm:$0xff]  ;;  %v621_v51 = vld [vmem:[%s5674_s4 + $0x60] sm:$0xff]  ;;  %v1110_v54 = vld [vmem:[%s5676_s6 + $0x58] sm:$0xff] }
  0x29   : > { %v867_v52 = vld [vmem:[%s5675_s5 + $0x68] sm:$0xff]  ;;  %v866_v53 = vld [vmem:[%s5675_s5 + $0x60] sm:$0xff]  ;;  %v1109_v55 = vld [vmem:[%s5676_s6 + $0x50] sm:$0xff] }
  0x2a   : > { %642 = vperm.xlu1 %3178, %v612_v10   ;;  %v443_v56 = vld [vmem:[%s5751_s3 + $0x78] sm:$0xff]  ;;  %v442_v57 = vld [vmem:[%s5751_s3 + $0x70] sm:$0xff]  ;;  %v1112_v62 = vld [vmem:[%s5676_s6 + $0x68] sm:$0xff]  ;;  %s422_s3 = scalar_lea.vmem %s5672_s2, %s5891_s26  ;;  %s3006_s26 = sshll.u32 %s3843_s10, 6 }
  0x2b   : > { %456 = vperm.xlu0 %3177, %v430_v9   ;;  %v624_v58 = vld [vmem:[%s5674_s4 + $0x78] sm:$0xff]  ;;  %v623_v59 = vld [vmem:[%s5674_s4 + $0x70] sm:$0xff]  ;;  %v1111_v63 = vld [vmem:[%s5676_s6 + $0x60] sm:$0xff]  ;;  %v539_v9 = vsub.s32 3, %v4064_v3  ;;  %s5628_s18 = scalar_lea.hbm %s5681_s11, %s3006_s26  ;;  %s3758_s10 = smov [#allocation3]  }
  0x2c   : > { %v869_v60 = vld [vmem:[%s5675_s5 + $0x78] sm:$0xff]  ;;  %v868_v61 = vld [vmem:[%s5675_s5 + $0x70] sm:$0xff]  ;;  %v1724_v4 = vld [vmem:[%s5678_s8 + $0x8] sm:$0xff]  ;;  %s3695_s25 = sshll.u32 %s3758_s10, 4  ;;  %s3696_s25 = int_to_ptr.vmem [resolvable:$false] %s3695_s25 }
  0x2d   : > { %v1114_v1 = vld [vmem:[%s5676_s6 + $0x78] sm:$0xff]  ;;  %v1113_v2 = vld [vmem:[%s5676_s6 + $0x70] sm:$0xff]  ;;  %v1723_v8 = vld [vmem:[%s5678_s8] sm:$0xff]  ;;  %s3697_s12 = scalar_lea.vmem %s3696_s25, 128 }
  0x2e   : > { %887 = vperm.xlu1 %3178, %v857_v12  }
  0x2f   : > { %637 = vperm.xlu0 %3177, %v611_v11   ;;  %v426_v11 = vld [vmem:[%s417_s30] sm:$0xf]  ;;  %s406_s30 = sand.u32 1, %s3745_s20  }
  0x30   : > { %s2869_s13 = sshll.u32 %s406_s30, 2  ;;  %s2777_s23 = scalar_lea.sflag [#allocation4], %s406_s30 }
  0x32   : > { %1122 = vperm.xlu1 %3178, %v1100_v14   ;;  %v1726_v14 = vld [vmem:[%s5678_s8 + $0x18] sm:$0xff] }
  0x33   : > { %882 = vperm.xlu0 %3177, %v856_v13   ;;  %v425_v13 = vld [vmem:[%s412_s14] sm:$0xf]  ;;  %s408_s14 = scalar_lea.vmem [#allocation3], %s2869_s13 }
  0x34   : > { %s2791_s15 = sshll.u32 %s408_s14, 4  ;;  %s5630_s15 = int_to_ptr.vmem [resolvable:$true] %s2791_s15 }
  0x35   : > { %p3698_p0 = scmp.lt.s32.totalorder %s5630_s15, %s3696_s25 }
  0x36   : > { %471 = vperm.xlu1 %3178, %v433_v16   ;;  %v4093_v16 = vrot.slane %v426_v11, %v531_v6 }
  0x37   : > { %1117 = vperm.xlu0 %3177, %v1099_v15   ;;  %v4091_v15 = vrot.slane %v426_v11, %v4076_v5 }
  0x38   : > { %5755 = vst [vmem:[#allocation9_spill] sm:$0xff] %v4093_v16 }
  0x39   : > { %5754 = vst [vmem:[#allocation8_spill] sm:$0xff] %v4091_v15 }
  0x3a   : > { %652 = vperm.xlu1 %3178, %v614_v18   ;;  %v1725_v18 = vld [vmem:[%s5678_s8 + $0x10] sm:$0xff] }
  0x3b   : > { %466 = vperm.xlu0 %3177, %v432_v17   ;;  %v4095_v17 = vrot.slane %v426_v11, %v535_v7 }
  0x3e   : > { %897 = vperm.xlu1 %3178, %v859_v20   ;;  %v4100_v20 = vrot.slane %v426_v11, %v539_v9  ;;  %v1731_v11 = vld [vmem:[%s5678_s8 + $0x40] sm:$0xff] }
  0x3f   : > { %647 = vperm.xlu0 %3177, %v613_v19   ;;  %v427_v19 = vld [vmem:[%s422_s3] sm:$0xf]  ;;  %s3691_s3 = scalar_lea.vmem %s5630_s15, 64 }
  0x40   : > { %p3692_p11 = scmp.ne.s32.totalorder %s5630_s15, %s3691_s3  ;;  %p3699_p1 = scmp.lt.s32.totalorder %s3697_s12, %s3691_s3 }
  0x42   : > { %1132 = vperm.xlu1 %3178, %v1102_v22   ;;  %p3693_p12 = pnand %p3692_p11, %p3860_p5  ;;  %p3700_p2 = por %p3699_p1, %p3698_p0 }
  0x43   : > { %892 = vperm.xlu0 %3177, %v858_v21   ;;  %v4103_v21 = vrot.slane %v425_v13, %v4076_v5 }
  0x44   : > { %p3694_p13 = pneg %p3693_p12 }
  0x45   : > { %5756 = vst [vmem:[#allocation10_spill] sm:$0xff] %v4103_v21 }
  0x46   : > { %481 = vperm.xlu1 %3178, %v435_v24   ;;  %v4105_v24 = vrot.slane %v425_v13, %v531_v6  ;;  %p3701_p3 = pnand %p3700_p2, %p3694_p13 }
  0x47   : > { %1127 = vperm.xlu0 %3177, %v1101_v23  }
  0x48   : > { %5757 = vst [vmem:[#allocation11_spill] sm:$0xff] %v4105_v24 }
  0x4a   : > { %662 = vperm.xlu1 %3178, %v616_v26   ;;  %v4109_v26 = vrot.slane %v425_v13, %v539_v9 }
  0x4b   : > { %476 = vperm.xlu0 %3177, %v434_v25   ;;  %v4107_v25 = vrot.slane %v425_v13, %v535_v7 }
  0x4c   : > { %5759 = vst [vmem:[#allocation13_spill] sm:$0xff] %v4109_v26 }
  0x4d   : > { %5758 = vst [vmem:[#allocation12_spill] sm:$0xff] %v4107_v25 }
  0x4e   : > { %907 = vperm.xlu1 %3178, %v861_v28   ;;  %v4114_v28 = vrot.slane %v427_v19, %v531_v6 }
  0x4f   : > { %657 = vperm.xlu0 %3177, %v615_v27   ;;  %v4112_v27 = vrot.slane %v427_v19, %v4076_v5 }
  0x52   : > { %1142 = vperm.xlu1 %3178, %v1104_v30   ;;  %v1728_v30 = vld [vmem:[%s5678_s8 + $0x28] sm:$0xff] }
  0x53   : > { %902 = vperm.xlu0 %3177, %v860_v29   ;;  %v4116_v29 = vrot.slane %v427_v19, %v535_v7 }
  0x56   : > { %491 = vperm.xlu1 %3178, %v437_v32  }
  0x57   : > { %1137 = vperm.xlu0 %3177, %v1103_v31  }
  0x5a   : > { %672 = vperm.xlu1 %3178, %v618_v34   ;;  %v4124_v34 = vrot.slane %v427_v19, %v539_v9  ;;  %v1732_v9 = vld [vmem:[%s5678_s8 + $0x48] sm:$0xff] }
  0x5b   : > { %486 = vperm.xlu0 %3177, %v436_v33  }
  0x5e   : > { %917 = vperm.xlu1 %3178, %v863_v36  }
  0x5f   : > { %667 = vperm.xlu0 %3177, %v617_v35   ;;  %v1727_v35 = vld [vmem:[%s5678_s8 + $0x20] sm:$0xff] }
  0x62   : > { %1152 = vperm.xlu1 %3178, %v1106_v38  }
  0x63   : > { %912 = vperm.xlu0 %3177, %v862_v37  }
  0x66   : > { %501 = vperm.xlu1 %3178, %v439_v40  }
  0x67   : > { %1147 = vperm.xlu0 %3177, %v1105_v39  }
  0x6a   : > { %682 = vperm.xlu1 %3178, %v620_v42  }
  0x6b   : > { %496 = vperm.xlu0 %3177, %v438_v41  }
  0x6e   : > { %927 = vperm.xlu1 %3178, %v865_v44  }
  0x6f   : > { %677 = vperm.xlu0 %3177, %v619_v43  }
  0x72   : > { %1162 = vperm.xlu1 %3178, %v1108_v46  }
  0x73   : > { %922 = vperm.xlu0 %3177, %v864_v45  }
  0x76   : > { %511 = vperm.xlu1 %3178, %v441_v48  }
  0x77   : > { %1157 = vperm.xlu0 %3177, %v1107_v47  }
  0x7a   : > { %692 = vperm.xlu1 %3178, %v622_v50   ;;  %v1730_v50 = vld [vmem:[%s5678_s8 + $0x38] sm:$0xff] }
  0x7b   : > { %506 = vperm.xlu0 %3177, %v440_v49  }
  0x7e   : > { %937 = vperm.xlu1 %3178, %v867_v52  }
  0x7f   : > { %687 = vperm.xlu0 %3177, %v621_v51  }
  0x82   : > { %1172 = vperm.xlu1 %3178, %v1110_v54  }
  0x83   : > { %932 = vperm.xlu0 %3177, %v866_v53  }
  0x86   : > { %521 = vperm.xlu1 %3178, %v443_v56  }
  0x87   : > { %1167 = vperm.xlu0 %3177, %v1109_v55   ;;  %v1729_v55 = vld [vmem:[%s5678_s8 + $0x30] sm:$0xff] }
  0x8a   : > { %702 = vperm.xlu1 %3178, %v624_v58  }
  0x8b   : > { %516 = vperm.xlu0 %3177, %v442_v57  }
  0x8e   : > { %947 = vperm.xlu1 %3178, %v869_v60  }
  0x8f   : > { %697 = vperm.xlu0 %3177, %v623_v59  }
  0x92   : > { %1182 = vperm.xlu1 %3178, %v1112_v62  }
  0x93   : > { %942 = vperm.xlu0 %3177, %v868_v61  }
  0x96   : > { %1192 = vperm.xlu1 %3178, %v1114_v1  }
  0x97   : > { %1177 = vperm.xlu0 %3177, %v1111_v63  }
  0x99   : > { %v628_v10 = vpop.permute.xlu1 %627 }
  0x9a   : > { %1746 = vperm.xlu1 %3178, %v1724_v4   ;;  %v726_v31 = vmul.f32 %v4091_v15, %v628_v10  ;;  %v727_v32 = vmul.f32 %v4093_v16, %v628_v10  ;;  %v728_v33 = vmul.f32 %v4095_v17, %v628_v10  ;;  %v729_v36 = vmul.f32 %v4100_v20, %v628_v10 }
  0x9b   : > { %1187 = vperm.xlu0 %3177, %v1113_v2  }
  0x9d   : > { %v633_v22 = vpop.permute.xlu1 %632 }
  0x9e   : > { %v447_v12 = vpop.permute.xlu0 %446  ;;  %1756 = vperm.xlu1 %3178, %v1726_v14   ;;  %v730_v38 = vmul.f32 %v4091_v15, %v633_v22  ;;  %v731_v39 = vmul.f32 %v4093_v16, %v633_v22  ;;  %v733_v42 = vmul.f32 %v4100_v20, %v633_v22  ;;  %v732_v48 = vmul.f32 %v4095_v17, %v633_v22 }
  0x9f   : > { %1741 = vperm.xlu0 %3177, %v1723_v8   ;;  %v545_v37 = vmul.f32 %v4103_v21, %v447_v12  ;;  %v546_v46 = vmul.f32 %v4105_v24, %v447_v12  ;;  %v548_v47 = vmul.f32 %v4109_v26, %v447_v12  ;;  %v547_v51 = vmul.f32 %v4107_v25, %v447_v12 }
  0xa1   : > { %v878_v40 = vpop.permute.xlu1 %877  ;;  %v790_v4 = vadd.f32 %v726_v31, %v545_v37  ;;  %v791_v6 = vadd.f32 %v727_v32, %v546_v46  ;;  %v793_v7 = vadd.f32 %v729_v36, %v548_v47  ;;  %v792_v10 = vadd.f32 %v728_v33, %v547_v51  ;;  %v1733_v46 = vld [vmem:[%s5678_s8 + $0x50] sm:$0xff] }
  0xa2   : > { %v452_v23 = vpop.permute.xlu0 %451  ;;  %1766 = vperm.xlu1 %3178, %v1728_v30   ;;  %v975_v52 = vmul.f32 %v4112_v27, %v878_v40  ;;  %v976_v53 = vmul.f32 %v4114_v28, %v878_v40  ;;  %v978_v54 = vmul.f32 %v4124_v34, %v878_v40  ;;  %v977_v56 = vmul.f32 %v4116_v29, %v878_v40 }
  0xa3   : > { %1751 = vperm.xlu0 %3177, %v1725_v18   ;;  %v549_v43 = vmul.f32 %v4103_v21, %v452_v23  ;;  %v550_v44 = vmul.f32 %v4105_v24, %v452_v23  ;;  %v552_v45 = vmul.f32 %v4109_v26, %v452_v23  ;;  %v551_v49 = vmul.f32 %v4107_v25, %v452_v23 }
  0xa5   : > { %v462_v60 = vpop.permute.xlu1 %461  ;;  %v794_v62 = vadd.f32 %v730_v38, %v549_v43  ;;  %v795_v63 = vadd.f32 %v731_v39, %v550_v44  ;;  %v797_v1 = vadd.f32 %v733_v42, %v552_v45  ;;  %v796_v8 = vadd.f32 %v732_v48, %v551_v49 }
  0xa6   : > { %v873_v41 = vpop.permute.xlu0 %872  ;;  %1776 = vperm.xlu1 %3178, %v1730_v50   ;;  %v557_v37 = vmul.f32 %v4103_v21, %v462_v60  ;;  %v558_v42 = vmul.f32 %v4105_v24, %v462_v60  ;;  %v559_v43 = vmul.f32 %v4107_v25, %v462_v60  ;;  %v560_v44 = vmul.f32 %v4109_v26, %v462_v60 }
  0xa7   : > { %1761 = vperm.xlu0 %3177, %v1727_v35   ;;  %v971_v57 = vmul.f32 %v4112_v27, %v873_v41  ;;  %v972_v58 = vmul.f32 %v4114_v28, %v873_v41  ;;  %v974_v59 = vmul.f32 %v4124_v34, %v873_v41  ;;  %v973_v2 = vmul.f32 %v4116_v29, %v873_v41  ;;  %v1734_v41 = vld [vmem:[%s5678_s8 + $0x58] sm:$0xff] }
  0xa8   : > { %v1040_v12 = vadd.f32 %v976_v53, %v795_v63  ;;  %v1042_v13 = vadd.f32 %v978_v54, %v797_v1  ;;  %v1039_v14 = vadd.f32 %v975_v52, %v794_v62  ;;  %v4162_v31 = vadd.f32 %v977_v56, %v796_v8 }
  0xa9   : > { %v643_v18 = vpop.permute.xlu1 %642  ;;  %v1036_v22 = vadd.f32 %v972_v58, %v791_v6  ;;  %v1038_v23 = vadd.f32 %v974_v59, %v793_v7  ;;  %v1035_v30 = vadd.f32 %v971_v57, %v790_v4  ;;  %v4167_v36 = vadd.f32 %v973_v2, %v792_v10  ;;  %v1735_v4 = vld [vmem:[%s5678_s8 + $0x60] sm:$0xff] }
  0xaa   : > { %v457_v61 = vpop.permute.xlu0 %456  ;;  %v738_v32 = vmul.f32 %v4091_v15, %v643_v18  ;;  %v739_v35 = vmul.f32 %v4093_v16, %v643_v18  ;;  %v740_v33 = vmul.f32 %v4095_v17, %v643_v18  ;;  %1786 = vperm.xlu1 %3178, %v1732_v9   ;;  %v741_v38 = vmul.f32 %v4100_v20, %v643_v18 }
  0xab   : > { %1771 = vperm.xlu0 %3177, %v1729_v55   ;;  %v553_v45 = vmul.f32 %v4103_v21, %v457_v61  ;;  %v554_v47 = vmul.f32 %v4105_v24, %v457_v61  ;;  %v555_v48 = vmul.f32 %v4107_v25, %v457_v61  ;;  %v556_v49 = vmul.f32 %v4109_v26, %v457_v61  ;;  %v1736_v61 = vld [vmem:[%s5678_s8 + $0x68] sm:$0xff] }
  0xac   : > { %v802_v53 = vadd.f32 %v738_v32, %v557_v37  ;;  %v803_v54 = vadd.f32 %v739_v35, %v558_v42  ;;  %v804_v55 = vadd.f32 %v740_v33, %v559_v43  ;;  %v805_v57 = vadd.f32 %v741_v38, %v560_v44  ;;  %v1738_v33 = vld [vmem:[%s5678_s8 + $0x78] sm:$0xff] }
  0xad   : > { %v888_v51 = vpop.permute.xlu1 %887 }
  0xae   : > { %v638_v19 = vpop.permute.xlu0 %637  ;;  %1796 = vperm.xlu1 %3178, %v1734_v41   ;;  %v983_v60 = vmul.f32 %v4112_v27, %v888_v51  ;;  %v984_v62 = vmul.f32 %v4114_v28, %v888_v51  ;;  %v985_v63 = vmul.f32 %v4116_v29, %v888_v51  ;;  %v986_v1 = vmul.f32 %v4124_v34, %v888_v51 }
  0xaf   : > { %v734_v39 = vmul.f32 %v4091_v15, %v638_v19  ;;  %v735_v40 = vmul.f32 %v4093_v16, %v638_v19  ;;  %1781 = vperm.xlu0 %3177, %v1731_v11   ;;  %v736_v50 = vmul.f32 %v4095_v17, %v638_v19  ;;  %v737_v56 = vmul.f32 %v4100_v20, %v638_v19 }
  0xb0   : > { %v4211_v37 = vadd.f32 %v983_v60, %v802_v53  ;;  %v4226_v41 = vadd.f32 %v986_v1, %v805_v57 }
  0xb1   : > { %v798_v58 = vadd.f32 %v734_v39, %v553_v45  ;;  %v799_v59 = vadd.f32 %v735_v40, %v554_v47  ;;  %v800_v6 = vadd.f32 %v736_v50, %v555_v48  ;;  %v1123_v10 = vpop.permute.xlu1 %1122  ;;  %v801_v18 = vadd.f32 %v737_v56, %v556_v49  ;;  %v2590_v56 = vld [vmem:[#allocation2] sm:$0x1] }
  0xb2   : > { %v883_v52 = vpop.permute.xlu0 %882  ;;  %1806 = vperm.xlu1 %3178, %v1736_v61   ;;  %v4204_v32 = vadd.f32 %v1123_v10, %v1040_v12  ;;  %v4213_v38 = vadd.f32 %v1123_v10, %v1042_v13  ;;  %v4217_v40 = vadd.f32 %v1123_v10, %v1039_v14  ;;  %v1737_v12 = vld [vmem:[%s5678_s8 + $0x70] sm:$0xff]  ;;  %v4245_v49 = vadd.f32 %v1123_v10, %v4162_v31 }
  0xb3   : > { %1791 = vperm.xlu0 %3177, %v1733_v46   ;;  %v979_v2 = vmul.f32 %v4112_v27, %v883_v52  ;;  %v980_v7 = vmul.f32 %v4114_v28, %v883_v52  ;;  %v981_v8 = vmul.f32 %v4116_v29, %v883_v52  ;;  %v982_v9 = vmul.f32 %v4124_v34, %v883_v52 }
  0xb4   : > { %5761 = vst [vmem:[#allocation15_spill] sm:$0xff] %v4217_v40  ;;  %v2878_v46 = vmul.f32 -1.442695, %v4204_v32  ;;  %5763 = vst [vmem:[#allocation17_spill] sm:$0xff] %v4245_v49  ;;  %v4249_v51 = vmul.f32 -1.442695, %v4213_v38 }
  0xb5   : > { %v4228_v42 = vadd.f32 %v979_v2, %v798_v58  ;;  %v472_v43 = vpop.permute.xlu1 %471  ;;  %v4230_v13 = vadd.f32 %v980_v7, %v799_v59  ;;  %v4234_v14 = vadd.f32 %v982_v9, %v801_v18  ;;  %v4255_v53 = vmul.f32 -1.442695, %v4217_v40 }
  0xb6   : > { %v1118_v11 = vpop.permute.xlu0 %1117  ;;  %1816 = vperm.xlu1 %3178, %v1738_v33   ;;  %v565_v50 = vmul.f32 %v4103_v21, %v472_v43 }
  0xb7   : > { %v4202_v19 = vadd.f32 %v1118_v11, %v1036_v22  ;;  %v4206_v35 = vadd.f32 %v1118_v11, %v1038_v23  ;;  %1801 = vperm.xlu0 %3177, %v1735_v4   ;;  %v4215_v39 = vadd.f32 %v1118_v11, %v1035_v30  ;;  %v4222_v22 = vadd.f32 %v984_v62, %v803_v54 }
  0xb8   : > { %v4224_v23 = vadd.f32 %v985_v63, %v804_v55  ;;  %v4232_v30 = vadd.f32 %v981_v8, %v800_v6  ;;  %v4242_v48 = vadd.f32 %v1118_v11, %v4167_v36  ;;  %v566_v54 = vmul.f32 %v4105_v24, %v472_v43 }
  0xb9   : > { %5760 = vst [vmem:[#allocation14_spill] sm:$0xff] %v4215_v39  ;;  %v2874_v45 = vmul.f32 -1.442695, %v4202_v19  ;;  %v4239_v47 = vmul.f32 -1.442695, %v4206_v35  ;;  %v567_v36 = vmul.f32 %v4107_v25, %v472_v43  ;;  %v568_v55 = vmul.f32 %v4109_v26, %v472_v43  ;;  %v653_v60 = vpop.permute.xlu1 %652 }
  0xba   : > { %v467_v44 = vpop.permute.xlu0 %466  ;;  %5762 = vst [vmem:[#allocation16_spill] sm:$0xff] %v4242_v48  ;;  %v4252_v52 = vmul.f32 -1.442695, %v4215_v39  ;;  %v746_v62 = vmul.f32 %v4091_v15, %v653_v60  ;;  %v747_v63 = vmul.f32 %v4093_v16, %v653_v60  ;;  %v748_v1 = vmul.f32 %v4095_v17, %v653_v60 }
  0xbb   : > { %1811 = vperm.xlu0 %3177, %v1737_v12   ;;  %v561_v31 = vmul.f32 %v4103_v21, %v467_v44  ;;  %v562_v57 = vmul.f32 %v4105_v24, %v467_v44  ;;  %v563_v58 = vmul.f32 %v4107_v25, %v467_v44  ;;  %v564_v59 = vmul.f32 %v4109_v26, %v467_v44 }
  0xbc   : > { %3179 = vpow2.f32 %v2874_v45  ;;  %v749_v2 = vmul.f32 %v4100_v20, %v653_v60  ;;  %v810_v9 = vadd.f32 %v746_v62, %v565_v50  ;;  %v4273_v10 = vmul.f32 -1.442695, %v4242_v48 }
  0xbd   : > { %3181 = vpow2.f32 %v2878_v46  ;;  %v4276_v11 = vmul.f32 -1.442695, %v4245_v49  ;;  %v811_v18 = vadd.f32 %v747_v63, %v566_v54  ;;  %v812_v33 = vadd.f32 %v748_v1, %v567_v36  ;;  %v898_v44 = vpop.permute.xlu1 %897 }
  0xbe   : > { %v648_v61 = vpop.permute.xlu0 %647  ;;  %5764 = vst [vmem:[#allocation18_spill] sm:$0xff] %v4273_v10  ;;  %v813_v12 = vadd.f32 %v749_v2, %v568_v55  ;;  %v991_v60 = vmul.f32 %v4112_v27, %v898_v44  ;;  %v992_v0 = vmul.f32 %v4114_v28, %v898_v44  ;;  %v994_v46 = vmul.f32 %v4124_v34, %v898_v44 }
  0xbf   : > { %v742_v4 = vmul.f32 %v4091_v15, %v648_v61  ;;  %v743_v6 = vmul.f32 %v4093_v16, %v648_v61  ;;  %v744_v7 = vmul.f32 %v4095_v17, %v648_v61  ;;  %v745_v8 = vmul.f32 %v4100_v20, %v648_v61  ;;  %2593 = vperm.xlu0 %3177, %v2590_v56  }
  0xc0   : > { %5765 = vst [vmem:[#allocation19_spill] sm:$0xff] %v4276_v11  ;;  %v993_v56 = vmul.f32 %v4116_v29, %v898_v44  ;;  %v4288_v2 = vadd.f32 %v992_v0, %v811_v18  ;;  %v4292_v44 = vadd.f32 %v994_v46, %v813_v12  ;;  %3183 = vpow2.f32 %v4239_v47 }
  0xc1   : > { %v806_v43 = vadd.f32 %v742_v4, %v561_v31  ;;  %v807_v50 = vadd.f32 %v743_v6, %v562_v57  ;;  %v808_v61 = vadd.f32 %v744_v7, %v563_v58  ;;  %v809_v62 = vadd.f32 %v745_v8, %v564_v59  ;;  %v1133_v63 = vpop.permute.xlu1 %1132 }
  0xc2   : > { %v893_v45 = vpop.permute.xlu0 %892  ;;  %v4286_v31 = vadd.f32 %v991_v60, %v810_v9  ;;  %v4290_v4 = vadd.f32 %v993_v56, %v812_v33  ;;  %v4297_v58 = vadd.f32 %v1133_v63, %v4211_v37  ;;  %v4300_v59 = vadd.f32 %v1133_v63, %v4222_v22 }
  0xc3   : > { %v987_v3 = vmul.f32 %v4112_v27, %v893_v45  ;;  %v988_v54 = vmul.f32 %v4114_v28, %v893_v45  ;;  %v989_v36 = vmul.f32 %v4116_v29, %v893_v45  ;;  %v990_v55 = vmul.f32 %v4124_v34, %v893_v45 }
  0xc4   : > { %5766 = vst [vmem:[#allocation20_spill] sm:$0xff] %v4297_v58  ;;  %5767 = vst [vmem:[#allocation21_spill] sm:$0xff] %v4300_v59  ;;  %v4303_v6 = vadd.f32 %v1133_v63, %v4224_v23  ;;  %v4306_v7 = vadd.f32 %v1133_v63, %v4226_v41  ;;  %v2885_v22 = vmul.f32 -1.442695, %v4297_v58  ;;  %v2886_v23 = vmul.f32 -1.442695, %v4300_v59 }
  0xc5   : > { %v4294_v57 = vadd.f32 %v987_v3, %v806_v43  ;;  %v482_v18 = vpop.permute.xlu1 %481  ;;  %v4327_v12 = vadd.f32 %v989_v36, %v808_v61  ;;  %3185 = vpow2.f32 %v4249_v51  ;;  %v4332_v45 = vadd.f32 %v990_v55, %v809_v62 }
  0xc6   : > { %v1128_v1 = vpop.permute.xlu0 %1127  ;;  %5768 = vst [vmem:[#allocation22_spill] sm:$0xff] %v4303_v6  ;;  %5769 = vst [vmem:[#allocation23_spill] sm:$0xff] %v4306_v7  ;;  %v3180_v0 = vpop.eup %3179  ;;  %v2887_v41 = vmul.f32 -1.442695, %v4303_v6  ;;  %3187 = vpow2.f32 %v2885_v22  ;;  %v573_v56 = vmul.f32 %v4103_v21, %v482_v18  ;;  %v574_v46 = vmul.f32 %v4105_v24, %v482_v18 }
  0xc7   : > { %v4309_v8 = vadd.f32 %v1128_v1, %v4228_v42  ;;  %v4312_v9 = vadd.f32 %v1128_v1, %v4230_v13  ;;  %v4315_v3 = vadd.f32 %v1128_v1, %v4232_v30  ;;  %v4318_v37 = vadd.f32 %v1128_v1, %v4234_v14  ;;  %v3182_v30 = vpop.eup %3181 }
  0xc8   : > { %v2888_v42 = vmul.f32 -1.442695, %v4306_v7  ;;  %v4325_v13 = vadd.f32 %v988_v54, %v807_v50  ;;  %3189 = vpow2.f32 %v2886_v23  ;;  %v575_v51 = vmul.f32 %v4107_v25, %v482_v18 }
  0xc9   : > { %5770 = vst [vmem:[#allocation24_spill] sm:$0xff] %v4309_v8  ;;  %5771 = vst [vmem:[#allocation25_spill] sm:$0xff] %v4315_v3  ;;  %v2881_v14 = vmul.f32 -1.442695, %v4309_v8  ;;  %v2882_v43 = vmul.f32 -1.442695, %v4312_v9  ;;  %3191 = vpow2.f32 %v2887_v41  ;;  %v576_v50 = vmul.f32 %v4109_v26, %v482_v18  ;;  %v663_v36 = vpop.permute.xlu1 %662 }
  0xca   : > { %5772 = vst [vmem:[#allocation26_spill] sm:$0xff] %v4318_v37  ;;  %v477_v33 = vpop.permute.xlu0 %476  ;;  %v2883_v47 = vmul.f32 -1.442695, %v4315_v3  ;;  %v2884_v60 = vmul.f32 -1.442695, %v4318_v37  ;;  %3193 = vpow2.f32 %v2888_v42  ;;  %v754_v63 = vmul.f32 %v4091_v15, %v663_v36 }
  0xcb   : > { %v569_v61 = vmul.f32 %v4103_v21, %v477_v33  ;;  %v570_v62 = vmul.f32 %v4105_v24, %v477_v33  ;;  %v571_v54 = vmul.f32 %v4107_v25, %v477_v33  ;;  %3195 = vpow2.f32 %v2881_v14 }
  0xcc   : > { %v755_v1 = vmul.f32 %v4093_v16, %v663_v36  ;;  %v756_v22 = vmul.f32 %v4095_v17, %v663_v36  ;;  %3197 = vpow2.f32 %v2882_v43  ;;  %v757_v23 = vmul.f32 %v4100_v20, %v663_v36  ;;  %v3184_v36 = vpop.eup %3183 }
  0xcd   : > { %3199 = vpow2.f32 %v2883_v47  ;;  %v572_v18 = vmul.f32 %v4109_v26, %v477_v33  ;;  %v1452_v5 = vadd.f32 1.0, %v3180_v0  ;;  %v4350_v49 = vadd.f32 1.0, %v3182_v30  ;;  %v908_v43 = vpop.permute.xlu1 %907 }
  0xce   : > { %v658_v55 = vpop.permute.xlu0 %657  ;;  %3201 = vpow2.f32 %v2884_v60  ;;  %v4352_v14 = vadd.f32 %v754_v63, %v573_v56  ;;  %v4356_v6 = vadd.f32 %v755_v1, %v574_v46  ;;  %v4358_v3 = vadd.f32 %v756_v22, %v575_v51 }
  0xcf   : > { %v750_v41 = vmul.f32 %v4091_v15, %v658_v55  ;;  %v751_v42 = vmul.f32 %v4093_v16, %v658_v55  ;;  %v752_v48 = vmul.f32 %v4095_v17, %v658_v55  ;;  %v753_v40 = vmul.f32 %v4100_v20, %v658_v55  ;;  %v3186_v0 = vpop.eup %3185 }
  0xd0   : > { %v4360_v47 = vadd.f32 %v757_v23, %v576_v50  ;;  %v4369_v56 = vmul.f32 %v4112_v27, %v908_v43  ;;  %v4372_v55 = vmul.f32 %v4114_v28, %v908_v43  ;;  %v3188_v63 = vpop.eup %3187  ;;  %v4377_v51 = vmul.f32 %v4116_v29, %v908_v43 }
  0xd1   : > { %v4362_v33 = vadd.f32 %v750_v41, %v569_v61  ;;  %v4364_v30 = vadd.f32 %v751_v42, %v570_v62  ;;  %v4366_v60 = vadd.f32 %v752_v48, %v571_v54  ;;  %v4374_v46 = vadd.f32 %v753_v40, %v572_v18  ;;  %v1143_v22 = vpop.permute.xlu1 %1142 }
  0xd2   : > { %v903_v39 = vpop.permute.xlu0 %902  ;;  %v4380_v50 = vmul.f32 %v4124_v34, %v908_v43  ;;  %v3190_v48 = vpop.eup %3189  ;;  %v1463_v62 = vadd.f32 1.0, %v3188_v63  ;;  %v4395_v18 = vadd.f32 %v1143_v22, %v4286_v31  ;;  %3203 = vrcp.f32 %v1452_v5 }
  0xd3   : > { %v4383_v61 = vmul.f32 %v4112_v27, %v903_v39  ;;  %v4386_v54 = vmul.f32 %v4114_v28, %v903_v39  ;;  %v4389_v1 = vmul.f32 %v4116_v29, %v903_v39  ;;  %v4392_v40 = vmul.f32 %v4124_v34, %v903_v39  ;;  %v3192_v41 = vpop.eup %3191 }
  0xd4   : > { %v1464_v42 = vadd.f32 1.0, %v3190_v48  ;;  %5773 = vst [vmem:[#allocation27_spill] sm:$0xff] %v4395_v18  ;;  %v4397_v43 = vadd.f32 1.0, %v3184_v36  ;;  %v3194_v63 = vpop.eup %3193  ;;  %v1465_v58 = vadd.f32 1.0, %v3192_v41  ;;  %3205 = vrcp.f32 %v1463_v62 }
  0xd5   : > { %v4400_v8 = vadd.f32 %v1143_v22, %v4288_v2  ;;  %v4402_v7 = vadd.f32 1.0, %v3186_v0  ;;  %v3196_v39 = vpop.eup %3195  ;;  %v1466_v37 = vadd.f32 1.0, %v3194_v63  ;;  %v4405_v11 = vadd.f32 %v1143_v22, %v4290_v4  ;;  %v492_v2 = vpop.permute.xlu1 %491 }
  0xd6   : > { %v1138_v23 = vpop.permute.xlu0 %1137  ;;  %3207 = vrcp.f32 %v1464_v42  ;;  %v4408_v31 = vadd.f32 %v1143_v22, %v4292_v44  ;;  %v3198_v5 = vpop.eup %3197  ;;  %v1459_v36 = vadd.f32 1.0, %v3196_v39  ;;  %v2893_v48 = vmul.f32 -1.442695, %v4395_v18 }
  0xd7   : > { %5774 = vst [vmem:[#allocation28_spill] sm:$0xff] %v4400_v8  ;;  %5775 = vst [vmem:[#allocation29_spill] sm:$0xff] %v4405_v11  ;;  %3209 = vrcp.f32 %v1465_v58  ;;  %v4412_v62 = vadd.f32 %v1138_v23, %v4294_v57  ;;  %v3200_v41 = vpop.eup %3199  ;;  %v1460_v63 = vadd.f32 1.0, %v3198_v5  ;;  %v4415_v42 = vadd.f32 %v1138_v23, %v4325_v13 }
  0xd8   : > { %5776 = vst [vmem:[#allocation30_spill] sm:$0xff] %v4408_v31  ;;  %3211 = vrcp.f32 %v1466_v37  ;;  %v4418_v4 = vadd.f32 %v1138_v23, %v4327_v12  ;;  %v3202_v44 = vpop.eup %3201  ;;  %v1461_v22 = vadd.f32 1.0, %v3200_v41  ;;  %v2894_v58 = vmul.f32 -1.442695, %v4400_v8 }
  0xd9   : > { %5777 = vst [vmem:[#allocation31_spill] sm:$0xff] %v4412_v62  ;;  %5778 = vst [vmem:[#allocation32_spill] sm:$0xff] %v4415_v42  ;;  %3213 = vrcp.f32 %v1459_v36  ;;  %v4422_v39 = vadd.f32 %v1138_v23, %v4332_v45  ;;  %v1462_v57 = vadd.f32 1.0, %v3202_v44  ;;  %v2895_v18 = vmul.f32 -1.442695, %v4405_v11  ;;  %v673_v41 = vpop.permute.xlu1 %672 }
  0xda   : > { %v487_v0 = vpop.permute.xlu0 %486  ;;  %5779 = vst [vmem:[#allocation33_spill] sm:$0xff] %v4418_v4  ;;  %3215 = vrcp.f32 %v1460_v63  ;;  %v2896_v37 = vmul.f32 -1.442695, %v4408_v31  ;;  %v2889_v13 = vmul.f32 -1.442695, %v4412_v62  ;;  %v581_v45 = vmul.f32 %v4103_v21, %v492_v2 }
  0xdb   : > { %5780 = vst [vmem:[#allocation34_spill] sm:$0xff] %v4422_v39  ;;  %3217 = vrcp.f32 %v1461_v22  ;;  %v2890_v12 = vmul.f32 -1.442695, %v4415_v42  ;;  %v2891_v5 = vmul.f32 -1.442695, %v4418_v4  ;;  %v582_v23 = vmul.f32 %v4105_v24, %v492_v2 }
  0xdc   : > { %3219 = vrcp.f32 %v1462_v57  ;;  %v2892_v36 = vmul.f32 -1.442695, %v4422_v39  ;;  %v583_v44 = vmul.f32 %v4107_v25, %v492_v2  ;;  %v584_v22 = vmul.f32 %v4109_v26, %v492_v2  ;;  %v3204_v62 = vpop.eup %3203 }
  0xdd   : > { %3221 = vpow2.f32 %v2893_v48  ;;  %v577_v11 = vmul.f32 %v4103_v21, %v487_v0  ;;  %v578_v4 = vmul.f32 %v4105_v24, %v487_v0  ;;  %v762_v57 = vmul.f32 %v4091_v15, %v673_v41  ;;  %v918_v2 = vpop.permute.xlu1 %917 }
  0xde   : > { %v668_v63 = vpop.permute.xlu0 %667  ;;  %3223 = vpow2.f32 %v2894_v58  ;;  %v763_v31 = vmul.f32 %v4093_v16, %v673_v41  ;;  %v4438_v39 = vpop.eup %3205  ;;  %v764_v8 = vmul.f32 %v4095_v17, %v673_v41  ;;  %v765_v48 = vmul.f32 %v4100_v20, %v673_v41 }
  0xdf   : > { %5781 = vst [vmem:[#allocation35_spill] sm:$0xff] %v4438_v39  ;;  %3225 = vpow2.f32 %v2895_v18  ;;  %v758_v42 = vmul.f32 %v4091_v15, %v668_v63  ;;  %v579_v58 = vmul.f32 %v4107_v25, %v487_v0  ;;  %v580_v24 = vmul.f32 %v4109_v26, %v487_v0 }
  0xe0   : > { %v4443_v59 = vpop.eup %3207  ;;  %3227 = vpow2.f32 %v2896_v37  ;;  %v759_v21 = vmul.f32 %v4093_v16, %v668_v63  ;;  %v4451_v18 = vmul.f32 %v3204_v62, %v4202_v19  ;;  %v4453_v39 = vadd.f32 %v762_v57, %v581_v45 }
  0xe1   : > { %v4448_v10 = vpop.eup %3209  ;;  %3229 = vpow2.f32 %v2889_v13  ;;  %v760_v41 = vmul.f32 %v4095_v17, %v668_v63  ;;  %v4458_v37 = vadd.f32 %v763_v31, %v582_v23  ;;  %v4460_v25 = vadd.f32 %v764_v8, %v583_v44 }
  0xe2   : > { %v4456_v15 = vpop.eup %3211  ;;  %3231 = vpow2.f32 %v2890_v12  ;;  %v761_v0 = vmul.f32 %v4100_v20, %v668_v63  ;;  %v4465_v13 = vadd.f32 %v765_v48, %v584_v22  ;;  %v4467_v19 = vadd.f32 %v758_v42, %v577_v11  ;;  %v913_v45 = vpop.permute.xlu0 %912 }
  0xe3   : > { %v4463_v16 = vpop.eup %3213  ;;  %3233 = vpow2.f32 %v2891_v5  ;;  %v4469_v62 = vadd.f32 %v759_v21, %v578_v4  ;;  %v4473_v12 = vadd.f32 %v760_v41, %v579_v58  ;;  %v4476_v8 = vmul.f32 %v4112_v27, %v918_v2  ;;  %v1153_v4 = vpop.permute.xlu1 %1152 }
  0xe4   : > { %v4471_v57 = vpop.eup %3215  ;;  %3235 = vpow2.f32 %v2892_v36  ;;  %v4479_v31 = vmul.f32 %v4114_v28, %v918_v2  ;;  %v4484_v11 = vadd.f32 %v761_v0, %v580_v24  ;;  %v4487_v21 = vmul.f32 %v4116_v29, %v918_v2 }
  0xe5   : > { %v4481_v23 = vpop.eup %3217  ;;  %3237 = vrcp.f32 %v4350_v49  ;;  %v4490_v42 = vmul.f32 %v4124_v34, %v918_v2  ;;  %v4496_v36 = vmul.f32 %v4112_v27, %v913_v45  ;;  %v1063_v63 = vadd.f32 %v4369_v56, %v4352_v14 }
  0xe6   : > { %v4492_v5 = vpop.eup %3219  ;;  %3239 = vrcp.f32 %v4397_v43  ;;  %v1064_v24 = vadd.f32 %v4372_v55, %v4356_v6  ;;  %v4504_v44 = vmul.f32 %v4114_v28, %v913_v45  ;;  %v4507_v22 = vmul.f32 %v4116_v29, %v913_v45 }
  0xe7   : > { %v3222_v49 = vpop.eup %3221  ;;  %3241 = vrcp.f32 %v4402_v7  ;;  %v1065_v43 = vadd.f32 %v4377_v51, %v4358_v3  ;;  %v4512_v14 = vadd.f32 %v1153_v4, %v1063_v63  ;;  %v1066_v7 = vadd.f32 %v4380_v50, %v4360_v47 }
  0xe8   : > { %v3224_v48 = vpop.eup %3223  ;;  %v1471_v2 = vadd.f32 1.0, %v3222_v49  ;;  %3243 = vpow2.f32 %v4252_v52  ;;  %v4514_v56 = vadd.f32 %v1153_v4, %v1064_v24  ;;  %v4522_v3 = vmul.f32 %v4124_v34, %v913_v45  ;;  %v1148_v52 = vpop.permute.xlu0 %1147 }
  0xe9   : > { %5782 = vst [vmem:[#allocation36_spill] sm:$0xff] %v4512_v14  ;;  %v3226_v6 = vpop.eup %3225  ;;  %v1472_v55 = vadd.f32 1.0, %v3224_v48  ;;  %3245 = vpow2.f32 %v4255_v53  ;;  %v4519_v58 = vadd.f32 %v1153_v4, %v1065_v43  ;;  %v1059_v51 = vadd.f32 %v4383_v61, %v4362_v33 }
  0xea   : > { %5783 = vst [vmem:[#allocation37_spill] sm:$0xff] %v4514_v56  ;;  %v3228_v41 = vpop.eup %3227  ;;  %v1473_v0 = vadd.f32 1.0, %v3226_v6  ;;  %3247 = vrcp.f32 %v1471_v2  ;;  %v4526_v49 = vadd.f32 %v1153_v4, %v1066_v7  ;;  %v2901_v53 = vmul.f32 -1.442695, %v4512_v14  ;;  %v5809_v14 = vld [vmem:[#allocation9_spill] sm:$0xff] }
  0xeb   : > { %5784 = vst [vmem:[#allocation38_spill] sm:$0xff] %v4519_v58  ;;  %v3230_v63 = vpop.eup %3229  ;;  %v1474_v24 = vadd.f32 1.0, %v3228_v41  ;;  %3249 = vrcp.f32 %v1472_v55  ;;  %v2902_v43 = vmul.f32 -1.442695, %v4514_v56  ;;  %v2903_v48 = vmul.f32 -1.442695, %v4519_v58 }
  0xec   : > { %5785 = vst [vmem:[#allocation39_spill] sm:$0xff] %v4526_v49  ;;  %v3232_v47 = vpop.eup %3231  ;;  %3251 = vrcp.f32 %v1473_v0  ;;  %v1467_v50 = vadd.f32 1.0, %v3230_v63  ;;  %v1060_v33 = vadd.f32 %v4386_v54, %v4364_v30  ;;  %v4533_v61 = vadd.f32 %v1148_v52, %v1059_v51 }
  0xed   : > { %v3234_v45 = vpop.eup %3233  ;;  %3253 = vrcp.f32 %v1474_v24  ;;  %v1468_v2 = vadd.f32 1.0, %v3232_v47  ;;  %v1061_v55 = vadd.f32 %v4389_v1, %v4366_v60  ;;  %v1062_v7 = vadd.f32 %v4392_v40, %v4374_v46 }
  0xee   : > { %5786 = vst [vmem:[#allocation40_spill] sm:$0xff] %v4533_v61  ;;  %v3236_v6 = vpop.eup %3235  ;;  %v1469_v4 = vadd.f32 1.0, %v3234_v45  ;;  %3255 = vrcp.f32 %v1467_v50  ;;  %v2904_v63 = vmul.f32 -1.442695, %v4526_v49  ;;  %v4540_v24 = vadd.f32 %v1148_v52, %v1060_v33  ;;  %v502_v50 = vpop.permute.xlu1 %501  ;;  %v5790_v33 = vld [vmem:[#allocation18_spill] sm:$0xff] }
  0xef   : > { %v3238_v41 = vpop.eup %3237  ;;  %v1470_v0 = vadd.f32 1.0, %v3236_v6  ;;  %3257 = vrcp.f32 %v1468_v2  ;;  %v4543_v54 = vadd.f32 %v1148_v52, %v1061_v55  ;;  %v4545_v51 = vadd.f32 %v1148_v52, %v1062_v7  ;;  %v5791_v52 = vld [vmem:[#allocation21_spill] sm:$0xff]  ;;  %v5792_v7 = vld [vmem:[#allocation19_spill] sm:$0xff] }
  0xf0   : > { %5787 = vst [vmem:[#allocation41_spill] sm:$0xff] %v4540_v24  ;;  %v3240_v47 = vpop.eup %3239  ;;  %3259 = vrcp.f32 %v1469_v4  ;;  %v1648_v30 = vmul.f32 %v3238_v41, %v4204_v32  ;;  %v2897_v1 = vmul.f32 -1.442695, %v4533_v61  ;;  %v4551_v40 = vmul.f32 %v4471_v57, %v4312_v9  ;;  %v497_v4 = vpop.permute.xlu0 %496  ;;  %v5793_v41 = vld [vmem:[#allocation26_spill] sm:$0xff]  ;;  %v5794_v57 = vld [vmem:[#allocation23_spill] sm:$0xff] }
  0xf1   : > { %5788 = vst [vmem:[#allocation42_spill] sm:$0xff] %v4543_v54  ;;  %5789 = vst [vmem:[#allocation43_spill] sm:$0xff] %v4545_v51  ;;  %v3242_v60 = vpop.eup %3241  ;;  %3261 = vrcp.f32 %v1470_v0  ;;  %v1646_v46 = vmul.f32 %v3240_v47, %v4206_v35  ;;  %v4558_v6 = vmul.f32 %v4443_v59, %v5791_v52  ;;  %v4563_v9 = vmul.f32 %v4492_v5, %v5793_v41 }
  0xf2   : > { %v3244_v45 = vpop.eup %3243  ;;  %v3007_v2 = vpack.c.bf16 %v1648_v30, %v4451_v18  ;;  %v1650_v32 = vmul.f32 %v3242_v60, %v4213_v38  ;;  %3263 = vpow2.f32 %v5790_v33  ;;  %v4567_v18 = vmul.f32 %v4456_v15, %v5794_v57  ;;  %v5797_v33 = vld [vmem:[#allocation20_spill] sm:$0xff]  ;;  %v5798_v15 = vld [vmem:[#allocation35_spill] sm:$0xff] }
  0xf3   : > { %v3246_v55 = vpop.eup %3245  ;;  %v1451_v35 = vadd.f32 1.0, %v3244_v45  ;;  %3265 = vpow2.f32 %v5792_v7  ;;  %v2898_v59 = vmul.f32 -1.442695, %v4540_v24  ;;  %v2899_v60 = vmul.f32 -1.442695, %v4543_v54  ;;  %v5796_v45 = vld [vmem:[#allocation24_spill] sm:$0xff] }
  0xf4   : > { %v4569_v38 = vpop.eup %3247  ;;  %3008 = vmatprep.subr.bf16.mxu0 %v3007_v2  ;;  %v3039_v0 = vpack.c.bf16 %v1650_v32, %v1646_v46  ;;  %v1455_v47 = vadd.f32 1.0, %v3246_v55  ;;  %3267 = vpow2.f32 %v2901_v53  ;;  %v4577_v5 = vmul.f32 %v4463_v16, %v5796_v45  ;;  %v5800_v46 = vld [vmem:[#allocation25_spill] sm:$0xff]  ;;  %v5802_v32 = vld [vmem:[#allocation22_spill] sm:$0xff]  ;;  %v683_v16 = vpop.permute.xlu1 %682 }
  0xf5   : > { %5795 = vst [vmem:[#allocation18_spill] sm:$0xff] %v4569_v38  ;;  %v4572_v30 = vpop.eup %3249  ;;  %3269 = vrcp.f32 %v1451_v35  ;;  %v4581_v52 = vmul.f32 %v5798_v15, %v5797_v33  ;;  %v2900_v53 = vmul.f32 -1.442695, %v4545_v51  ;;  %v4588_v2 = vmul.f32 %v4481_v23, %v5800_v46  ;;  %v5806_v15 = vld [vmem:[#allocation12_spill] sm:$0xff] }
  0xf6   : > { %v4583_v7 = vpop.eup %3251  ;;  %3040 = vmatprep.subr.bf16.mxu1 %v3039_v0  ;;  %3271 = vrcp.f32 %v1455_v47  ;;  %v4592_v55 = vmul.f32 %v4448_v10, %v5802_v32  ;;  %v5804_v0 = vld [vmem:[#allocation10_spill] sm:$0xff]  ;;  %v5805_v10 = vld [vmem:[#allocation11_spill] sm:$0xff]  ;;  %v591_v46 = vmul.f32 %v5806_v15, %v502_v50  ;;  %v678_v32 = vpop.permute.xlu0 %677  ;;  %v592_v57 = vmul.f32 %v4109_v26, %v502_v50 }
  0xf7   : > { %5799 = vst [vmem:[#allocation21_spill] sm:$0xff] %v4583_v7  ;;  %5801 = vst [vmem:[#allocation19_spill] sm:$0xff] %v4588_v2  ;;  %v4594_v35 = vpop.eup %3253  ;;  %3273 = vpow2.f32 %v2902_v43  ;;  %v589_v47 = vmul.f32 %v5804_v0, %v502_v50  ;;  %v590_v33 = vmul.f32 %v5805_v10, %v502_v50  ;;  %v585_v58 = vmul.f32 %v5804_v0, %v497_v4 }
  0xf8   : > { %5803 = vst [vmem:[#allocation26_spill] sm:$0xff] %v4592_v55  ;;  %v4601_v45 = vpop.eup %3255  ;;  %3275 = vpow2.f32 %v2903_v48  ;;  %v5808_v48 = vld [vmem:[#allocation8_spill] sm:$0xff]  ;;  %v771_v61 = vmul.f32 %v5809_v14, %v683_v16  ;;  %v772_v49 = vmul.f32 %v4095_v17, %v683_v16  ;;  %v773_v41 = vmul.f32 %v4100_v20, %v683_v16  ;;  %v928_v2 = vpop.permute.xlu1 %927 }
  0xf9   : > { %v4607_v43 = vpop.eup %3257  ;;  %3277 = vpow2.f32 %v2904_v63  ;;  %v770_v23 = vmul.f32 %v5808_v48, %v683_v16  ;;  %v586_v63 = vmul.f32 %v5805_v10, %v497_v4  ;;  %v766_v50 = vmul.f32 %v5808_v48, %v678_v32 }
  0xfa   : > { %v4613_v54 = vpop.eup %3259  ;;  %3279 = vpow2.f32 %v2897_v1  ;;  %v587_v24 = vmul.f32 %v5806_v15, %v497_v4  ;;  %v588_v1 = vmul.f32 %v4109_v26, %v497_v4  ;;  %v767_v0 = vmul.f32 %v5809_v14, %v678_v32  ;;  %v4634_v15 = vpop.permute.xlu0 %922 }
  0xfb   : > { %5807 = vst [vmem:[#allocation23_spill] sm:$0xff] %v4613_v54  ;;  %v4618_v51 = vpop.eup %3261  ;;  %3281 = vpow2.f32 %v2898_v59  ;;  %v4626_v54 = vadd.f32 %v770_v23, %v589_v47  ;;  %v768_v59 = vmul.f32 %v4095_v17, %v678_v32  ;;  %v4629_v38 = vadd.f32 %v771_v61, %v590_v33  ;;  %v5810_v47 = vld [vmem:[#allocation14_spill] sm:$0xff]  ;;  %v5811_v33 = vld [vmem:[#allocation15_spill] sm:$0xff] }
  0xfc   : > { %v3264_v56 = vpop.eup %3263  ;;  %3283 = vpow2.f32 %v2899_v60  ;;  %v4631_v48 = vadd.f32 %v772_v49, %v591_v46  ;;  %v769_v60 = vmul.f32 %v4100_v20, %v678_v32  ;;  %v4636_v26 = vadd.f32 %v773_v41, %v592_v57 }
  0xfd   : > { %v3266_v55 = vpop.eup %3265  ;;  %v1453_v7 = vadd.f32 1.0, %v3264_v56  ;;  %3285 = vpow2.f32 %v2900_v53  ;;  %v4638_v56 = vadd.f32 %v766_v50, %v585_v58  ;;  %v4643_v61 = vadd.f32 %v768_v59, %v587_v24 }
  0xfe   : > { %v3268_v10 = vpop.eup %3267  ;;  %v1457_v16 = vadd.f32 1.0, %v3266_v55  ;;  %v4641_v55 = vadd.f32 %v767_v0, %v586_v63  ;;  %v4646_v32 = vadd.f32 %v769_v60, %v588_v1  ;;  %v4652_v41 = vmul.f32 %v4114_v28, %v928_v2  ;;  %v1163_v0 = vpop.permute.xlu1 %1162 }
  0xff   : > { %v3270_v4 = vpop.eup %3269  ;;  %3287 = vrcp.f32 %v1453_v7  ;;  %v1479_v14 = vadd.f32 1.0, %v3268_v10  ;;  %v4649_v7 = vmul.f32 %v4112_v27, %v928_v2  ;;  %v4655_v10 = vmul.f32 %v4116_v29, %v928_v2 }
 0x100   : > { %v3272_v53 = vpop.eup %3271  ;;  %v1643_v23 = vmul.f32 %v3270_v4, %v5810_v47  ;;  %3289 = vrcp.f32 %v1457_v16  ;;  %v4658_v24 = vmul.f32 %v4124_v34, %v928_v2  ;;  %v4662_v59 = vmul.f32 %v4112_v27, %v4634_v15 }
 0x101   : > { %v3274_v49 = vpop.eup %3273  ;;  %v1647_v46 = vmul.f32 %v3272_v53, %v5811_v33  ;;  %3291 = vrcp.f32 %v1479_v14  ;;  %v1071_v16 = vadd.f32 %v4476_v8, %v4453_v39  ;;  %v1072_v14 = vadd.f32 %v4479_v31, %v4458_v37  ;;  %v1158_v53 = vpop.permute.xlu0 %1157 }
 0x102   : > { %v3276_v58 = vpop.eup %3275  ;;  %v1480_v57 = vadd.f32 1.0, %v3274_v49  ;;  %v1073_v2 = vadd.f32 %v4487_v21, %v4460_v25  ;;  %v1074_v49 = vadd.f32 %v4490_v42, %v4465_v13 }
 0x103   : > { %v3278_v63 = vpop.eup %3277  ;;  %v3009_v50 = vpack.c.bf16 %v1647_v46, %v1643_v23  ;;  %v1481_v1 = vadd.f32 1.0, %v3276_v58  ;;  %v4672_v33 = vadd.f32 %v1163_v0, %v1071_v16  ;;  %v5813_v46 = vpack.c.bf16 %v4558_v6, %v4551_v40 }
 0x104   : > { %v3280_v60 = vpop.eup %3279  ;;  %v1482_v4 = vadd.f32 1.0, %v3278_v63  ;;  %3293 = vrcp.f32 %v1480_v57  ;;  %v4677_v37 = vadd.f32 %v1163_v0, %v1072_v14  ;;  %v4679_v25 = vadd.f32 %v1163_v0, %v1073_v2 }
 0x105   : > { %v3282_v47 = vpop.eup %3281  ;;  %3010 = vmatpush1.bf16.msra.mxu0 %v3009_v50  ;;  %3295 = vrcp.f32 %v1481_v1  ;;  %v1475_v23 = vadd.f32 1.0, %v3280_v60  ;;  %5812 = vst [vmem:[#allocation24_spill] sm:$0xff] %v4672_v33  ;;  %v4681_v58 = vadd.f32 %v1163_v0, %v1074_v49  ;;  %v2909_v13 = vmul.f32 -1.442695, %v4672_v33  ;;  %v4686_v50 = vpop.permute.xlu1 %511 }
 0x106   : > { %v3284_v39 = vpop.eup %3283  ;;  %3297 = vrcp.f32 %v1482_v4  ;;  %v1476_v8 = vadd.f32 1.0, %v3282_v47  ;;  %3012 = vmatprep.subr.bf16.mxu0 %v5813_v46  ;;  %5814 = vst [vmem:[#allocation20_spill] sm:$0xff] %v4677_v37  ;;  %5815 = vst [vmem:[#allocation35_spill] sm:$0xff] %v4679_v25  ;;  %v2910_v57 = vmul.f32 -1.442695, %v4677_v37  ;;  %v5817_v6 = vpack.c.bf16 %v4581_v52, %v4577_v5  ;;  %v5818_v4 = vld [vmem:[#allocation16_spill] sm:$0xff]  ;;  %v4701_v5 = vpop.permute.xlu0 %506 }
 0x107   : > { %v3286_v31 = vpop.eup %3285  ;;  %v1477_v21 = vadd.f32 1.0, %v3284_v39  ;;  %3299 = vrcp.f32 %v1475_v23  ;;  %5816 = vst [vmem:[#allocation25_spill] sm:$0xff] %v4681_v58  ;;  %v2911_v63 = vmul.f32 -1.442695, %v4679_v25  ;;  %v2912_v1 = vmul.f32 -1.442695, %v4681_v58 }
 0x108   : > { %v1478_v42 = vadd.f32 1.0, %v3286_v31  ;;  %3301 = vrcp.f32 %v1476_v8  ;;  %v1067_v0 = vadd.f32 %v4496_v36, %v4467_v19  ;;  %v1068_v16 = vadd.f32 %v4504_v44, %v4469_v62  ;;  %v5819_v52 = vld [vmem:[#allocation17_spill] sm:$0xff] }
 0x109   : > { %v3288_v40 = vpop.eup %3287  ;;  %3303 = vrcp.f32 %v1477_v21  ;;  %3014 = vmatpush1.bf16.msra.mxu0 %v5817_v6  ;;  %v1069_v2 = vadd.f32 %v4507_v22, %v4473_v12  ;;  %v1070_v47 = vadd.f32 %v4522_v3, %v4484_v11  ;;  %v5824_v12 = vld [vmem:[#allocation32_spill] sm:$0xff]  ;;  %v5828_v6 = vld [vmem:[#allocation31_spill] sm:$0xff] }
 0x10a   : > { %v3290_v60 = vpop.eup %3289  ;;  %v1645_v14 = vmul.f32 %v3288_v40, %v5818_v4  ;;  %3305 = vrcp.f32 %v1478_v42  ;;  %v4704_v49 = vadd.f32 %v1158_v53, %v1067_v0  ;;  %v4706_v19 = vadd.f32 %v1158_v53, %v1068_v16  ;;  %v5825_v21 = vld [vmem:[#allocation28_spill] sm:$0xff]  ;;  %v5831_v4 = vld [vmem:[#allocation18_spill] sm:$0xff] }
 0x10b   : > { %v1649_v23 = vmul.f32 %v3290_v60, %v5819_v52  ;;  %3307 = vpow2.f32 %v2909_v13  ;;  %v4708_v62 = vpop.eup %3291  ;;  %v4710_v36 = vadd.f32 %v1158_v53, %v1069_v2  ;;  %v4712_v44 = vadd.f32 %v1158_v53, %v1070_v47  ;;  %v693_v13 = vpop.permute.xlu1 %692  ;;  %v5830_v60 = vld [vmem:[#allocation27_spill] sm:$0xff]  ;;  %v5832_v2 = vld [vmem:[#allocation33_spill] sm:$0xff] }
 0x10c   : > { %5820 = vst [vmem:[#allocation22_spill] sm:$0xff] %v4704_v49  ;;  %5821 = vst [vmem:[#allocation14_spill] sm:$0xff] %v4706_v19  ;;  %3309 = vpow2.f32 %v2910_v57  ;;  %v1660_v22 = vmul.f32 %v4607_v43, %v5824_v12  ;;  %v2905_v3 = vmul.f32 -1.442695, %v4704_v49  ;;  %v2906_v39 = vmul.f32 -1.442695, %v4706_v19  ;;  %v688_v52 = vpop.permute.xlu0 %687 }
 0x10d   : > { %5822 = vst [vmem:[#allocation15_spill] sm:$0xff] %v4710_v36  ;;  %5823 = vst [vmem:[#allocation16_spill] sm:$0xff] %v4712_v44  ;;  %v3041_v11 = vpack.c.bf16 %v1649_v23, %v1645_v14  ;;  %3311 = vpow2.f32 %v2911_v63  ;;  %v2907_v46 = vmul.f32 -1.442695, %v4710_v36  ;;  %v2908_v31 = vmul.f32 -1.442695, %v4712_v44 }
 0x10e   : > { %v4718_v8 = vpop.eup %3293  ;;  %3313 = vpow2.f32 %v2912_v1  ;;  %v1664_v53 = vmul.f32 %v4572_v30, %v5825_v21  ;;  %v5826_v43 = vld [vmem:[#allocation34_spill] sm:$0xff]  ;;  %v1659_v1 = vmul.f32 %v4601_v45, %v5828_v6  ;;  %v5829_v16 = vpack.c.bf16 %v4567_v18, %v4563_v9  ;;  %v5833_v47 = vld [vmem:[#allocation23_spill] sm:$0xff]  ;;  %v5834_v12 = vld [vmem:[#allocation29_spill] sm:$0xff] }
 0x10f   : > { %v4724_v42 = vpop.eup %3295  ;;  %3042 = vmatpush1.bf16.msra.mxu1 %v3041_v11  ;;  %3315 = vpow2.f32 %v2905_v3  ;;  %v1662_v57 = vmul.f32 %v4618_v51, %v5826_v43  ;;  %v5827_v63 = vld [vmem:[#allocation30_spill] sm:$0xff]  ;;  %v1663_v14 = vmul.f32 %v5831_v4, %v5830_v60  ;;  %v1661_v51 = vmul.f32 %v5833_v47, %v5832_v2  ;;  %v5835_v9 = vld [vmem:[#allocation21_spill] sm:$0xff]  ;;  %v5840_v6 = vld [vmem:[#allocation11_spill] sm:$0xff]  ;;  %v938_v47 = vpop.permute.xlu1 %937 }
 0x110   : > { %v1666_v40 = vmul.f32 %v4594_v35, %v5827_v63  ;;  %v4732_v0 = vpop.eup %3297  ;;  %3044 = vmatprep.subr.bf16.mxu1 %v5829_v16  ;;  %3317 = vpow2.f32 %v2906_v39  ;;  %v3015_v30 = vpack.c.bf16 %v1664_v53, %v1660_v22  ;;  %v4745_v35 = vmul.f32 %v4114_v28, %v4634_v15  ;;  %v5837_v53 = vld [vmem:[#allocation19_spill] sm:$0xff]  ;;  %v5839_v63 = vld [vmem:[#allocation10_spill] sm:$0xff]  ;;  %v5841_v60 = vld [vmem:[#allocation12_spill] sm:$0xff]  ;;  %v4787_v33 = vpop.permute.xlu0 %932 }
 0x111   : > { %v4741_v23 = vpop.eup %3299  ;;  %3319 = vpow2.f32 %v2907_v46  ;;  %v1665_v18 = vmul.f32 %v5835_v9, %v5834_v12  ;;  %v4753_v22 = vmul.f32 %v4116_v29, %v4634_v15  ;;  %v4757_v3 = vmul.f32 %v4124_v34, %v4634_v15  ;;  %v5836_v46 = vld [vmem:[#allocation26_spill] sm:$0xff]  ;;  %v5844_v9 = vld [vmem:[#allocation9_spill] sm:$0xff] }
 0x112   : > { %v3047_v45 = vpack.c.bf16 %v1666_v40, %v1662_v57  ;;  %v4749_v11 = vpop.eup %3301  ;;  %3321 = vpow2.f32 %v2908_v31  ;;  %3016 = vmatprep.subr.bf16.mxu0 %v3015_v30  ;;  %v3017_v39 = vpack.c.bf16 %v1663_v14, %v1659_v1  ;;  %v5838_v43 = vpack.c.bf16 %v5836_v46, %v5837_v53  ;;  %v5842_v31 = vld [vmem:[#allocation13_spill] sm:$0xff]  ;;  %v5843_v14 = vld [vmem:[#allocation8_spill] sm:$0xff] }
 0x113   : > { %v4759_v21 = vpop.eup %3303  ;;  %v3049_v57 = vpack.c.bf16 %v1665_v18, %v1661_v51  ;;  %v597_v40 = vmul.f32 %v5839_v63, %v4686_v50  ;;  %v598_v16 = vmul.f32 %v5840_v6, %v4686_v50  ;;  %v599_v15 = vmul.f32 %v5841_v60, %v4686_v50 }
 0x114   : > { %3046 = vmatpush1.bf16.msra.mxu1 %v5838_v43  ;;  %v4770_v4 = vpop.eup %3305  ;;  %3018 = vmatpush1.bf16.msra.mxu0 %v3017_v39  ;;  %v600_v1 = vmul.f32 %v5842_v31, %v4686_v50  ;;  %v593_v30 = vmul.f32 %v5839_v63, %v4701_v5  ;;  %v778_v2 = vmul.f32 %v5843_v14, %v693_v13  ;;  %v5743_v39 = vmov 0.0  }
 0x115   : > { %3048 = vmatprep.subr.bf16.mxu1 %v3047_v45  ;;  %v3308_v51 = vpop.eup %3307  ;;  %v594_v12 = vmul.f32 %v5840_v6, %v4701_v5  ;;  %v779_v18 = vmul.f32 %v5844_v9, %v693_v13  ;;  %v780_v46 = vmul.f32 %v4095_v17, %v693_v13  ;;  %v781_v45 = vmul.f32 %v4100_v20, %v693_v13 }
 0x116   : > { %1883 = vmatprep.mubr.f32.mxu0 %v5743_v39  ;;  %v3310_v50 = vpop.eup %3309  ;;  %v1487_v53 = vadd.f32 1.0, %v3308_v51  ;;  %v595_v43 = vmul.f32 %v5841_v60, %v4701_v5  ;;  %v774_v25 = vmul.f32 %v5843_v14, %v688_v52  ;;  %v775_v36 = vmul.f32 %v5844_v9, %v688_v52  ;;  %2044 = vmatprep.mubr.f32.mxu1 %v5743_v39 }
 0x117   : > { %v3312_v49 = vpop.eup %3311  ;;  %v1488_v58 = vadd.f32 1.0, %v3310_v50  ;;  %v596_v13 = vmul.f32 %v5842_v31, %v4701_v5  ;;  %v4792_v44 = vadd.f32 %v778_v2, %v597_v40  ;;  %v776_v51 = vmul.f32 %v4095_v17, %v688_v52 }
 0x118   : > { %3050 = vmatpush1.bf16.msra.mxu1 %v3049_v57  ;;  %v3314_v37 = vpop.eup %3313  ;;  %v1489_v19 = vadd.f32 1.0, %v3312_v49  ;;  %3323 = vrcp.f32 %v1487_v53  ;;  %v4795_v14 = vadd.f32 %v779_v18, %v598_v16  ;;  %v777_v9 = vmul.f32 %v4100_v20, %v688_v52  ;;  %v1173_v49 = vpop.permute.xlu1 %1172 }
 0x119   : > { %v3316_v60 = vpop.eup %3315  ;;  %v1490_v6 = vadd.f32 1.0, %v3314_v37  ;;  %3325 = vrcp.f32 %v1488_v58  ;;  %v4798_v39 = vadd.f32 %v780_v46, %v599_v15  ;;  %v4800_v57 = vadd.f32 %v781_v45, %v600_v1 }
 0x11a   : > { %v3318_v50 = vpop.eup %3317  ;;  %3327 = vrcp.f32 %v1489_v19  ;;  %v1483_v5 = vadd.f32 1.0, %v3316_v60  ;;  %v4802_v40 = vadd.f32 %v774_v25, %v593_v30  ;;  %v4804_v2 = vadd.f32 %v775_v36, %v594_v12  ;;  %v1168_v25 = vpop.permute.xlu0 %1167 }
 0x11b   : > { %v3320_v53 = vpop.eup %3319  ;;  %3329 = vrcp.f32 %v1490_v6  ;;  %v1484_v16 = vadd.f32 1.0, %v3318_v50  ;;  %v4806_v18 = vadd.f32 %v776_v51, %v595_v43  ;;  %v4808_v52 = vadd.f32 %v777_v9, %v596_v13 }
 0x11c   : > { %v3322_v37 = vpop.eup %3321  ;;  %v1485_v58 = vadd.f32 1.0, %v3320_v53  ;;  %3331 = vrcp.f32 %v1483_v5  ;;  %v4811_v15 = vmul.f32 %v4112_v27, %v938_v47  ;;  %v4814_v19 = vmul.f32 %v4114_v28, %v938_v47  ;;  %v5847_v53 = vld [vmem:[#allocation41_spill] sm:$0xff] }
 0x11d   : > { %v1486_v36 = vadd.f32 1.0, %v3322_v37  ;;  %3333 = vrcp.f32 %v1484_v16  ;;  %v4817_v60 = vmul.f32 %v4116_v29, %v938_v47  ;;  %v4820_v6 = vmul.f32 %v4124_v34, %v938_v47 }
 0x11e   : > { %3335 = vrcp.f32 %v1485_v58  ;;  %v4824_v1 = vmul.f32 %v4112_v27, %v4787_v33  ;;  %v1079_v30 = vadd.f32 %v4649_v7, %v4626_v54  ;;  %v1080_v12 = vadd.f32 %v4652_v41, %v4629_v38  ;;  %v522_v7 = vpop.permute.xlu1 %521 }
 0x11f   : > { %3337 = vrcp.f32 %v1486_v36  ;;  %v1081_v9 = vadd.f32 %v4655_v10, %v4631_v48  ;;  %v1082_v46 = vadd.f32 %v4658_v24, %v4636_v26  ;;  %v1075_v47 = vadd.f32 %v4662_v59, %v4638_v56  ;;  %v5848_v36 = vld [vmem:[#allocation37_spill] sm:$0xff] }
 0x120   : > { %v4836_v45 = vadd.f32 %v1173_v49, %v1079_v30  ;;  %v4838_v43 = vadd.f32 %v1173_v49, %v1080_v12  ;;  %v1076_v54 = vadd.f32 %v4745_v35, %v4641_v55  ;;  %v1077_v38 = vadd.f32 %v4753_v22, %v4643_v61  ;;  %v517_v61 = vpop.permute.xlu0 %516  ;;  %v5849_v30 = vld [vmem:[#allocation43_spill] sm:$0xff] }
 0x121   : > { %v4844_v41 = vadd.f32 %v1173_v49, %v1081_v9  ;;  %v4846_v48 = vadd.f32 %v1173_v49, %v1082_v46  ;;  %v1078_v26 = vadd.f32 %v4757_v3, %v4646_v32  ;;  %v4850_v10 = vadd.f32 %v1168_v25, %v1075_v47  ;;  %v5850_v46 = vld [vmem:[#allocation39_spill] sm:$0xff] }
 0x122   : > { %v4852_v56 = vpop.eup %3323  ;;  %v2917_v24 = vmul.f32 -1.442695, %v4836_v45  ;;  %v2918_v59 = vmul.f32 -1.442695, %v4838_v43  ;;  %v4856_v55 = vadd.f32 %v1168_v25, %v1076_v54  ;;  %v4858_v35 = vadd.f32 %v1168_v25, %v1077_v38  ;;  %v5851_v54 = vld [vmem:[#allocation40_spill] sm:$0xff] }
 0x123   : > { %5845 = vst [vmem:[#allocation17_spill] sm:$0xff] %v4844_v41  ;;  %v4860_v22 = vpop.eup %3325  ;;  %v2919_v13 = vmul.f32 -1.442695, %v4844_v41  ;;  %v2920_v51 = vmul.f32 -1.442695, %v4846_v48  ;;  %v4864_v32 = vadd.f32 %v1168_v25, %v1078_v26  ;;  %v1668_v16 = vmul.f32 %v4749_v11, %v5847_v53  ;;  %v5852_v38 = vld [vmem:[#allocation36_spill] sm:$0xff] }
 0x124   : > { %5846 = vst [vmem:[#allocation32_spill] sm:$0xff] %v4858_v35  ;;  %v2913_v3 = vmul.f32 -1.442695, %v4850_v10  ;;  %v4867_v50 = vpop.eup %3327  ;;  %3339 = vpow2.f32 %v2917_v24  ;;  %v2914_v5 = vmul.f32 -1.442695, %v4856_v55  ;;  %v1672_v25 = vmul.f32 %v4718_v8, %v5848_v36  ;;  %v703_v24 = vpop.permute.xlu1 %702  ;;  %v5853_v53 = vld [vmem:[#allocation42_spill] sm:$0xff] }
 0x125   : > { %v2915_v49 = vmul.f32 -1.442695, %v4858_v35  ;;  %v4873_v37 = vpop.eup %3329  ;;  %3341 = vpow2.f32 %v2918_v59  ;;  %v2916_v58 = vmul.f32 -1.442695, %v4864_v32  ;;  %v1670_v12 = vmul.f32 %v4770_v4, %v5849_v30  ;;  %v5854_v36 = vld [vmem:[#allocation38_spill] sm:$0xff] }
 0x126   : > { %v4880_v9 = vpop.eup %3331  ;;  %3343 = vpow2.f32 %v2919_v13  ;;  %v1674_v47 = vmul.f32 %v4732_v0, %v5850_v46  ;;  %v1667_v11 = vmul.f32 %v4741_v23, %v5851_v54  ;;  %v1671_v26 = vmul.f32 %v4708_v62, %v5852_v38  ;;  %v698_v46 = vpop.permute.xlu0 %697 }
 0x127   : > { %v4888_v59 = vpop.eup %3333  ;;  %3345 = vpow2.f32 %v2920_v51  ;;  %v3019_v8 = vpack.c.bf16 %v1672_v25, %v1668_v16  ;;  %v1669_v4 = vmul.f32 %v4759_v21, %v5853_v53  ;;  %v1673_v13 = vmul.f32 %v4724_v42, %v5854_v36  ;;  %v5855_v16 = vld [vmem:[#allocation11_spill] sm:$0xff] }
 0x128   : > { %v4894_v30 = vpop.eup %3335  ;;  %v4898_v0 = vmul.f32 %v4114_v28, %v4787_v33  ;;  %3347 = vpow2.f32 %v2913_v3  ;;  %v3051_v23 = vpack.c.bf16 %v1674_v47, %v1670_v12  ;;  %v3021_v62 = vpack.c.bf16 %v1671_v26, %v1667_v11  ;;  %v5856_v12 = vld [vmem:[#allocation12_spill] sm:$0xff]  ;;  %v948_v36 = vpop.permute.xlu1 %947 }
 0x129   : > { %v4900_v54 = vpop.eup %3337  ;;  %v4904_v51 = vmul.f32 %v4116_v29, %v4787_v33  ;;  %v4908_v21 = vmul.f32 %v4124_v34, %v4787_v33  ;;  %3349 = vpow2.f32 %v2914_v5  ;;  %3020 = vmatprep.subr.bf16.mxu0 %v3019_v8  ;;  %v3053_v42 = vpack.c.bf16 %v1673_v13, %v1669_v4  ;;  %v5857_v33 = vld [vmem:[#allocation8_spill] sm:$0xff]  ;;  %v5858_v5 = vld [vmem:[#allocation9_spill] sm:$0xff] }
 0x12a   : > { %3351 = vpow2.f32 %v2915_v49  ;;  %3052 = vmatprep.subr.bf16.mxu1 %v3051_v23  ;;  %3022 = vmatpush1.bf16.msra.mxu0 %v3021_v62  ;;  %v605_v3 = vmul.f32 %v5839_v63, %v522_v7  ;;  %v606_v25 = vmul.f32 %v5855_v16, %v522_v7  ;;  %v607_v47 = vmul.f32 %v5856_v12, %v522_v7 }
 0x12b   : > { %3353 = vpow2.f32 %v2916_v58  ;;  %3054 = vmatpush1.bf16.msra.mxu1 %v3053_v42  ;;  %v608_v11 = vmul.f32 %v5842_v31, %v522_v7  ;;  %v601_v38 = vmul.f32 %v5839_v63, %v517_v61  ;;  %v786_v26 = vmul.f32 %v5857_v33, %v703_v24 }
 0x12c   : > { %v787_v8 = vmul.f32 %v5858_v5, %v703_v24  ;;  %v788_v49 = vmul.f32 %v4095_v17, %v703_v24  ;;  %v789_v53 = vmul.f32 %v4100_v20, %v703_v24  ;;  %v782_v4 = vmul.f32 %v5857_v33, %v698_v46  ;;  %v943_v33 = vpop.permute.xlu0 %942 }
 0x12d   : > { %v4921_v13 = vmul.f32 %v5855_v16, %v517_v61  ;;  %v4924_v58 = vmul.f32 %v5856_v12, %v517_v61  ;;  %v4927_v7 = vmul.f32 %v5842_v31, %v517_v61  ;;  %v4929_v63 = vadd.f32 %v786_v26, %v605_v3 }
 0x12e   : > { %v3340_v23 = vpop.eup %3339  ;;  %v4931_v62 = vadd.f32 %v787_v8, %v606_v25  ;;  %v4934_v42 = vmul.f32 %v5858_v5, %v698_v46  ;;  %v4937_v24 = vmul.f32 %v4095_v17, %v698_v46  ;;  %v4940_v16 = vmul.f32 %v4100_v20, %v698_v46 }
 0x12f   : > { %v3342_v12 = vpop.eup %3341  ;;  %v1495_v41 = vadd.f32 1.0, %v3340_v23  ;;  %v4942_v35 = vadd.f32 %v788_v49, %v607_v47  ;;  %v4944_v31 = vadd.f32 %v789_v53, %v608_v11  ;;  %v4946_v61 = vadd.f32 %v782_v4, %v601_v38  ;;  %v1183_v4 = vpop.permute.xlu1 %1182 }
 0x130   : > { %v3344_v3 = vpop.eup %3343  ;;  %v1496_v25 = vadd.f32 1.0, %v3342_v12  ;;  %v4949_v26 = vmul.f32 %v4112_v27, %v948_v36  ;;  %v4952_v17 = vmul.f32 %v4114_v28, %v948_v36  ;;  %v4955_v20 = vmul.f32 %v4116_v29, %v948_v36 }
 0x131   : > { %v3346_v46 = vpop.eup %3345  ;;  %v1497_v5 = vadd.f32 1.0, %v3344_v3  ;;  %3355 = vrcp.f32 %v1495_v41  ;;  %v4958_v47 = vmul.f32 %v4124_v34, %v948_v36  ;;  %v4961_v11 = vmul.f32 %v4112_v27, %v943_v33 }
 0x132   : > { %v3348_v38 = vpop.eup %3347  ;;  %v1498_v8 = vadd.f32 1.0, %v3346_v46  ;;  %3357 = vrcp.f32 %v1496_v25  ;;  %v4964_v49 = vmul.f32 %v4114_v28, %v943_v33  ;;  %v4967_v53 = vmul.f32 %v4116_v29, %v943_v33 }
 0x133   : > { %v3350_v23 = vpop.eup %3349  ;;  %3359 = vrcp.f32 %v1497_v5  ;;  %v1491_v12 = vadd.f32 1.0, %v3348_v38  ;;  %v4970_v41 = vmul.f32 %v4124_v34, %v943_v33  ;;  %v1087_v27 = vadd.f32 %v4811_v15, %v4792_v44 }
 0x134   : > { %v3352_v36 = vpop.eup %3351  ;;  %3361 = vrcp.f32 %v1498_v8  ;;  %v1492_v3 = vadd.f32 1.0, %v3350_v23  ;;  %v1088_v28 = vadd.f32 %v4814_v19, %v4795_v14  ;;  %v1089_v29 = vadd.f32 %v4817_v60, %v4798_v39  ;;  %v1178_v39 = vpop.permute.xlu0 %1177 }
 0x135   : > { %v3354_v25 = vpop.eup %3353  ;;  %v1493_v46 = vadd.f32 1.0, %v3352_v36  ;;  %3363 = vrcp.f32 %v1491_v12  ;;  %v1090_v5 = vadd.f32 %v4820_v6, %v4800_v57  ;;  %v4980_v34 = vadd.f32 %v1183_v4, %v1087_v27 }
 0x136   : > { %v1494_v33 = vadd.f32 1.0, %v3354_v25  ;;  %3365 = vrcp.f32 %v1492_v3  ;;  %v4982_v44 = vadd.f32 %v1183_v4, %v1088_v28  ;;  %v4984_v15 = vadd.f32 %v1183_v4, %v1089_v29  ;;  %v5860_v3 = vld [vmem:[#allocation20_spill] sm:$0xff] }
 0x137   : > { %3367 = vrcp.f32 %v1493_v46  ;;  %v4986_v38 = vadd.f32 %v1183_v4, %v1090_v5  ;;  %v2925_v14 = vmul.f32 -1.442695, %v4980_v34  ;;  %v1083_v19 = vadd.f32 %v4824_v1, %v4802_v40  ;;  %v5859_v1 = vld [vmem:[#allocation14_spill] sm:$0xff]  ;;  %v5861_v28 = vld [vmem:[#allocation16_spill] sm:$0xff] }
 0x138   : > { %3369 = vrcp.f32 %v1494_v33  ;;  %v2926_v57 = vmul.f32 -1.442695, %v4982_v44  ;;  %v2927_v60 = vmul.f32 -1.442695, %v4984_v15  ;;  %v1084_v6 = vadd.f32 %v4898_v0, %v4804_v2  ;;  %v5862_v33 = vld [vmem:[#allocation25_spill] sm:$0xff] }
 0x139   : > { %3371 = vpow2.f32 %v2925_v14  ;;  %v2928_v8 = vmul.f32 -1.442695, %v4986_v38  ;;  %v1085_v4 = vadd.f32 %v4904_v51, %v4806_v18  ;;  %v1086_v23 = vadd.f32 %v4908_v21, %v4808_v52 }
 0x13a   : > { %3373 = vpow2.f32 %v2926_v57  ;;  %v5000_v12 = vadd.f32 %v1178_v39, %v1083_v19  ;;  %v5002_v40 = vadd.f32 %v1178_v39, %v1084_v6  ;;  %v1676_v27 = vmul.f32 %v4888_v59, %v5859_v1  ;;  %v5864_v57 = vld [vmem:[#allocation24_spill] sm:$0xff]  ;;  %v5866_v1 = vld [vmem:[#allocation35_spill] sm:$0xff] }
 0x13b   : > { %v5006_v36 = vpop.eup %3355  ;;  %3375 = vpow2.f32 %v2927_v60  ;;  %v5008_v2 = vadd.f32 %v1178_v39, %v1085_v4  ;;  %v5010_v0 = vadd.f32 %v1178_v39, %v1086_v23  ;;  %v1680_v18 = vmul.f32 %v4860_v22, %v5860_v3  ;;  %v5863_v39 = vld [vmem:[#allocation22_spill] sm:$0xff] }
 0x13c   : > { %v5014_v51 = vpop.eup %3357  ;;  %3377 = vpow2.f32 %v2928_v8  ;;  %v2921_v52 = vmul.f32 -1.442695, %v5000_v12  ;;  %v2922_v21 = vmul.f32 -1.442695, %v5002_v40  ;;  %v1678_v59 = vmul.f32 %v4900_v54, %v5861_v28  ;;  %v5865_v54 = vld [vmem:[#allocation15_spill] sm:$0xff]  ;;  %v1193_v8 = vpop.permute.xlu1 %1192 }
 0x13d   : > { %v5020_v29 = vpop.eup %3359  ;;  %v2923_v25 = vmul.f32 -1.442695, %v5008_v2  ;;  %v2924_v46 = vmul.f32 -1.442695, %v5010_v0  ;;  %v3023_v5 = vpack.c.bf16 %v1680_v18, %v1676_v27  ;;  %v1682_v22 = vmul.f32 %v4873_v37, %v5862_v33 }
 0x13e   : > { %v5026_v14 = vpop.eup %3361  ;;  %3379 = vpow2.f32 %v2921_v52  ;;  %v1675_v19 = vmul.f32 %v4880_v9, %v5863_v39  ;;  %v1679_v60 = vmul.f32 %v4852_v56, %v5864_v57  ;;  %v1677_v6 = vmul.f32 %v4894_v30, %v5865_v54 }
 0x13f   : > { %v3364_v4 = vpop.eup %3363  ;;  %3381 = vpow2.f32 %v2922_v21  ;;  %3024 = vmatprep.subr.bf16.mxu0 %v3023_v5  ;;  %v3055_v23 = vpack.c.bf16 %v1682_v22, %v1678_v59  ;;  %v1681_v37 = vmul.f32 %v4867_v50, %v5866_v1  ;;  %v1095_v27 = vadd.f32 %v4949_v26, %v4929_v63  ;;  %v1188_v59 = vpop.permute.xlu0 %1187 }
 0x140   : > { %v3366_v3 = vpop.eup %3365  ;;  %3383 = vpow2.f32 %v2923_v25  ;;  %v3025_v9 = vpack.c.bf16 %v1679_v60, %v1675_v19  ;;  %v1096_v56 = vadd.f32 %v4952_v17, %v4931_v62  ;;  %v1097_v30 = vadd.f32 %v4955_v20, %v4942_v35 }
 0x141   : > { %v3368_v18 = vpop.eup %3367  ;;  %3385 = vpow2.f32 %v2924_v46  ;;  %3056 = vmatprep.subr.bf16.mxu1 %v3055_v23  ;;  %v3057_v52 = vpack.c.bf16 %v1681_v37, %v1677_v6  ;;  %v1098_v21 = vadd.f32 %v4958_v47, %v4944_v31  ;;  %v5044_v50 = vadd.f32 %v1193_v8, %v1095_v27 }
 0x142   : > { %v3370_v28 = vpop.eup %3369  ;;  %v847_v63 = vadd.f32 %v4934_v42, %v4921_v13  ;;  %v848_v26 = vadd.f32 %v4937_v24, %v4924_v58  ;;  %3026 = vmatpush1.bf16.msra.mxu0 %v3025_v9  ;;  %v5050_v62 = vadd.f32 %v1193_v8, %v1096_v56  ;;  %v5052_v35 = vadd.f32 %v1193_v8, %v1097_v30 }
 0x143   : > { %v3372_v17 = vpop.eup %3371  ;;  %v849_v20 = vadd.f32 %v4940_v16, %v4927_v7  ;;  %3058 = vmatpush1.bf16.msra.mxu1 %v3057_v52  ;;  %v5056_v31 = vadd.f32 %v1193_v8, %v1098_v21  ;;  %v2933_v47 = vmul.f32 -1.442695, %v5044_v50  ;;  %v1091_v58 = vadd.f32 %v4961_v11, %v4946_v61 }
 0x144   : > { %v3374_v25 = vpop.eup %3373  ;;  %v1503_v13 = vadd.f32 1.0, %v3372_v17  ;;  %v1092_v42 = vadd.f32 %v4964_v49, %v847_v63  ;;  %v1093_v24 = vadd.f32 %v4967_v53, %v848_v26  ;;  %v2934_v7 = vmul.f32 -1.442695, %v5050_v62 }
 0x145   : > { %v3376_v46 = vpop.eup %3375  ;;  %v1504_v5 = vadd.f32 1.0, %v3374_v25  ;;  %3387 = vpow2.f32 %v2933_v47  ;;  %v1094_v16 = vadd.f32 %v4970_v41, %v849_v20  ;;  %v2935_v39 = vmul.f32 -1.442695, %v5052_v35 }
 0x146   : > { %v3378_v33 = vpop.eup %3377  ;;  %v1505_v22 = vadd.f32 1.0, %v3376_v46  ;;  %3389 = vrcp.f32 %v1503_v13  ;;  %v5066_v19 = vadd.f32 %v1188_v59, %v1091_v58  ;;  %v2936_v61 = vmul.f32 -1.442695, %v5056_v31 }
 0x147   : > { %v1506_v57 = vadd.f32 1.0, %v3378_v33  ;;  %3391 = vrcp.f32 %v1504_v5  ;;  %v5069_v11 = vadd.f32 %v1188_v59, %v1092_v42  ;;  %v5071_v53 = vadd.f32 %v1188_v59, %v1093_v24 }
 0x148   : > { %v3380_v49 = vpop.eup %3379  ;;  %3393 = vrcp.f32 %v1505_v22  ;;  %v5073_v60 = vadd.f32 %v1188_v59, %v1094_v16  ;;  %v1684_v41 = vmul.f32 %v3366_v3, %v4856_v55  ;;  %v1688_v8 = vmul.f32 %v5014_v51, %v4838_v43  ;;  %v5867_v51 = vld [vmem:[#allocation32_spill] sm:$0xff] }
 0x149   : > { %v3382_v54 = vpop.eup %3381  ;;  %3395 = vrcp.f32 %v1506_v57  ;;  %v1499_v6 = vadd.f32 1.0, %v3380_v49  ;;  %v1686_v23 = vmul.f32 %v3370_v28, %v4864_v32  ;;  %v1690_v27 = vmul.f32 %v5026_v14, %v4846_v48  ;;  %v5868_v48 = vld [vmem:[#allocation17_spill] sm:$0xff] }
 0x14a   : > { %v3384_v1 = vpop.eup %3383  ;;  %v1500_v37 = vadd.f32 1.0, %v3382_v54  ;;  %3397 = vpow2.f32 %v2934_v7  ;;  %v1683_v9 = vmul.f32 %v3364_v4, %v4850_v10  ;;  %v3027_v55 = vpack.c.bf16 %v1688_v8, %v1684_v41 }
 0x14b   : > { %v3386_v56 = vpop.eup %3385  ;;  %v1501_v30 = vadd.f32 1.0, %v3384_v1  ;;  %3399 = vrcp.f32 %v1499_v6  ;;  %v1687_v3 = vmul.f32 %v5006_v36, %v4836_v45  ;;  %v3059_v43 = vpack.c.bf16 %v1690_v27, %v1686_v23 }
 0x14c   : > { %v1502_v52 = vadd.f32 1.0, %v3386_v56  ;;  %3401 = vrcp.f32 %v1500_v37  ;;  %v1685_v32 = vmul.f32 %v3368_v18, %v5867_v51  ;;  %v2929_v21 = vmul.f32 -1.442695, %v5066_v19  ;;  %3028 = vmatprep.subr.bf16.mxu0 %v3027_v55 }
 0x14d   : > { %3403 = vrcp.f32 %v1501_v30  ;;  %v3029_v28 = vpack.c.bf16 %v1687_v3, %v1683_v9  ;;  %v1689_v10 = vmul.f32 %v5020_v29, %v5868_v48  ;;  %3060 = vmatprep.subr.bf16.mxu1 %v3059_v43  ;;  %v2930_v4 = vmul.f32 -1.442695, %v5069_v11 }
 0x14e   : > { %3405 = vrcp.f32 %v1502_v52  ;;  %v2931_v18 = vmul.f32 -1.442695, %v5071_v53  ;;  %v2932_v26 = vmul.f32 -1.442695, %v5073_v60 }
 0x14f   : > { %v3388_v14 = vpop.eup %3387  ;;  %3407 = vpow2.f32 %v2935_v39  ;;  %3030 = vmatpush1.bf16.msra.mxu0 %v3029_v28  ;;  %v3061_v45 = vpack.c.bf16 %v1689_v10, %v1685_v32 }
 0x150   : > { %v3390_v36 = vpop.eup %3389  ;;  %3409 = vpow2.f32 %v2936_v61  ;;  %v1511_v58 = vadd.f32 1.0, %v3388_v14 }
 0x151   : > { %v3392_v63 = vpop.eup %3391  ;;  %3411 = vpow2.f32 %v2929_v21  ;;  %3062 = vmatpush1.bf16.msra.mxu1 %v3061_v45  ;;  %v1695_v47 = vmul.f32 %v3390_v36, %v4980_v34  ;;  %v1712_v45 = vld [vmem:[%s5677_s7 + $0x28] sm:$0xff]  ;;  %v1713_v36 = vld [vmem:[%s5677_s7 + $0x30] sm:$0xff] }
 0x152   : > { %v3394_v17 = vpop.eup %3393  ;;  %3413 = vpow2.f32 %v2930_v4  ;;  %v1696_v25 = vmul.f32 %v3392_v63, %v4982_v44  ;;  %v1715_v63 = vld [vmem:[%s5677_s7 + $0x40] sm:$0xff] }
 0x153   : > { %v3396_v20 = vpop.eup %3395  ;;  %3415 = vpow2.f32 %v2931_v18  ;;  %v1697_v24 = vmul.f32 %v3394_v17, %v4984_v15  ;;  %v1714_v18 = vld [vmem:[%s5677_s7 + $0x38] sm:$0xff]  ;;  %v1717_v17 = vld [vmem:[%s5677_s7 + $0x50] sm:$0xff] }
 0x154   : > { %v3398_v29 = vpop.eup %3397  ;;  %3417 = vpow2.f32 %v2932_v26  ;;  %v1698_v16 = vmul.f32 %v3396_v20, %v4986_v38  ;;  %v1716_v26 = vld [vmem:[%s5677_s7 + $0x48] sm:$0xff]  ;;  %v1718_v20 = vld [vmem:[%s5677_s7 + $0x58] sm:$0xff] }
 0x155   : > { %v3400_v59 = vpop.eup %3399  ;;  %v1512_v5 = vadd.f32 1.0, %v3398_v29  ;;  %3419 = vrcp.f32 %v1511_v58  ;;  %v1719_v29 = vld [vmem:[%s5677_s7 + $0x60] sm:$0xff] }
 0x156   : > { %v3402_v13 = vpop.eup %3401  ;;  %v1691_v42 = vmul.f32 %v3400_v59, %v5000_v12  ;;  %v1721_v59 = vld [vmem:[%s5677_s7 + $0x70] sm:$0xff] }
 0x157   : > { %v3404_v46 = vpop.eup %3403  ;;  %v1692_v7 = vmul.f32 %v3402_v13, %v5002_v40  ;;  %3421 = vrcp.f32 %v1512_v5  ;;  %v1742_v13 = vpop.permute.xlu0 %1741 }
 0x158   : > { %v3406_v33 = vpop.eup %3405  ;;  %v3033_v22 = vpack.c.bf16 %v1695_v47, %v1691_v42  ;;  %v1693_v34 = vmul.f32 %v3404_v46, %v5008_v2  ;;  %v1720_v47 = vld [vmem:[%s5677_s7 + $0x68] sm:$0xff] }
 0x159   : > { %v3408_v39 = vpop.eup %3407  ;;  %v3031_v57 = vpack.c.bf16 %v1696_v25, %v1692_v7  ;;  %v1694_v44 = vmul.f32 %v3406_v33, %v5010_v0  ;;  %v1722_v25 = vld [vmem:[%s5677_s7 + $0x78] sm:$0xff] }
 0x15a   : > { %v3410_v61 = vpop.eup %3409  ;;  %v1513_v49 = vadd.f32 1.0, %v3408_v39  ;;  %v3065_v12 = vpack.c.bf16 %v1697_v24, %v1693_v34 }
 0x15b   : > { %v3412_v41 = vpop.eup %3411  ;;  %v1514_v15 = vadd.f32 1.0, %v3410_v61  ;;  %3032 = vmatprep.subr.bf16.mxu0 %v3031_v57  ;;  %v3063_v54 = vpack.c.bf16 %v1698_v16, %v1694_v44 }
 0x15c   : > { %3423 = vrcp.f32 %v1513_v49  ;;  %v1507_v40 = vadd.f32 1.0, %v3412_v41  ;;  %3034 = vmatpush1.bf16.msra.mxu0 %v3033_v22  ;;  %v3414_v38 = vpop.eup %3413  ;;  %v1747_v22 = vpop.permute.xlu1 %1746 }
 0x15d   : > { %3425 = vrcp.f32 %v1514_v15  ;;  %3064 = vmatprep.subr.bf16.mxu1 %v3063_v54  ;;  %v3416_v2 = vpop.eup %3415  ;;  %v1508_v6 = vadd.f32 1.0, %v3414_v38 }
 0x15e   : > { %3427 = vrcp.f32 %v1507_v40  ;;  %3066 = vmatpush1.bf16.msra.mxu1 %v3065_v12  ;;  %v3418_v0 = vpop.eup %3417  ;;  %v1509_v8 = vadd.f32 1.0, %v3416_v2  ;;  %v1752_v2 = vpop.permute.xlu0 %1751 }
 0x15f   : > { %v1510_v23 = vadd.f32 1.0, %v3418_v0  ;;  %3429 = vrcp.f32 %v1508_v6  ;;  %v3420_v1 = vpop.eup %3419 }
 0x160   : > { %3431 = vrcp.f32 %v1509_v8  ;;  %v1703_v30 = vmul.f32 %v3420_v1, %v5044_v50 }
 0x161   : > { %3433 = vrcp.f32 %v1510_v23  ;;  %v3422_v37 = vpop.eup %3421 }
 0x162   : > { %v1704_v55 = vmul.f32 %v3422_v37, %v5050_v62 }
 0x166   : > { %v3424_v27 = vpop.eup %3423 }
 0x167   : > { %v3426_v9 = vpop.eup %3425  ;;  %v1705_v43 = vmul.f32 %v3424_v27, %v5052_v35  ;;  %v1707_v35 = vld [vmem:[%s5677_s7] sm:$0xff] }
 0x168   : > { %v3428_v56 = vpop.eup %3427  ;;  %v1706_v21 = vmul.f32 %v3426_v9, %v5056_v31  ;;  %v1708_v31 = vld [vmem:[%s5677_s7 + $0x8] sm:$0xff] }
 0x169   : > { %v1699_v3 = vmul.f32 %v3428_v56, %v5066_v19  ;;  %v3430_v52 = vpop.eup %3429  ;;  %v5869_v19 = vmov 0.0  }
 0x16a   : > { %v3432_v51 = vpop.eup %3431  ;;  %v1700_v32 = vmul.f32 %v3430_v52, %v5069_v11  ;;  %v1709_v11 = vld [vmem:[%s5677_s7 + $0x10] sm:$0xff]  ;;  %v1757_v52 = vpop.permute.xlu1 %1756 }
 0x16b   : > { %v3434_v28 = vpop.eup %3433  ;;  %v3037_v48 = vpack.c.bf16 %v1703_v30, %v1699_v3  ;;  %v1701_v10 = vmul.f32 %v3432_v51, %v5071_v53  ;;  %v1710_v53 = vld [vmem:[%s5677_s7 + $0x18] sm:$0xff] }
 0x16c   : > { %v3035_v14 = vpack.c.bf16 %v1704_v55, %v1700_v32  ;;  %v1702_v4 = vmul.f32 %v3434_v28, %v5073_v60  ;;  %v1711_v60 = vld [vmem:[%s5677_s7 + $0x20] sm:$0xff] }
 0x16d   : > { %v3069_v50 = vpack.c.bf16 %v1705_v43, %v1701_v10 }
 0x16e   : > { %3036 = vmatprep.subr.bf16.mxu0 %v3035_v14  ;;  %v3067_v62 = vpack.c.bf16 %v1706_v21, %v1702_v4 }
 0x16f   : > { %3038 = vmatpush1.bf16.msra.mxu0 %v3037_v48 }
 0x170   : > { %3068 = vmatprep.subr.bf16.mxu1 %v3067_v62 }
 0x171   : > { %3070 = vmatpush1.bf16.msra.mxu1 %v3069_v50 }
 0x172   : > { %1884 = vmatmul.mubr.f32.vlgmr.msra.gmra.mrb[0].mxu0 %v1707_v35 }
 0x173   : > { %1889 = vmatprep.mubr.f32.mxu0 %v5869_v19 }
 0x174   : > { %2045 = vmatmul.mubr.f32.vlgmr.msra.gmra.mrb[0].mxu1 %v1707_v35 }
 0x175   : > { %2050 = vmatprep.mubr.f32.mxu1 %v5869_v19 }
 0x176   : > { %1890 = vmatmul.mubr.f32.gmra.mrb[2].mxu0 %v1708_v31 }
 0x177   : > { %1895 = vmatprep.mubr.f32.mxu0 %v5869_v19 }
 0x178   : > { %2051 = vmatmul.mubr.f32.gmra.mrb[2].mxu1 %v1708_v31 }
 0x179   : > { %2056 = vmatprep.mubr.f32.mxu1 %v5869_v19 }
 0x17a   : > { %1896 = vmatmul.mubr.f32.gmra.mrb[4].mxu0 %v1709_v11 }
 0x17b   : > { %1901 = vmatprep.mubr.f32.mxu0 %v5869_v19 }
 0x17c   : > { %2057 = vmatmul.mubr.f32.gmra.mrb[4].mxu1 %v1709_v11 }
 0x17d   : > { %2062 = vmatprep.mubr.f32.mxu1 %v5869_v19 }
 0x17e   : > { %1902 = vmatmul.mubr.f32.gmra.mrb[6].mxu0 %v1710_v53 }
 0x17f   : > { %1907 = vmatprep.mubr.f32.mxu0 %v5869_v19 }
 0x180   : > { %2063 = vmatmul.mubr.f32.gmra.mrb[6].mxu1 %v1710_v53 }
 0x181   : > { %2068 = vmatprep.mubr.f32.mxu1 %v5869_v19 }
 0x182   : > { %1908 = vmatmul.mubr.f32.gmra.mrb[8].mxu0 %v1711_v60 }
 0x183   : > { %1913 = vmatprep.mubr.f32.mxu0 %v5869_v19 }
 0x184   : > { %2069 = vmatmul.mubr.f32.gmra.mrb[8].mxu1 %v1711_v60 }
 0x185   : > { %2074 = vmatprep.mubr.f32.mxu1 %v5869_v19 }
 0x186   : > { %1914 = vmatmul.mubr.f32.gmra.mrb[10].mxu0 %v1712_v45 }
 0x187   : > { %1919 = vmatprep.mubr.f32.mxu0 %v5869_v19 }
 0x188   : > { %2075 = vmatmul.mubr.f32.gmra.mrb[10].mxu1 %v1712_v45 }
 0x189   : > { %2080 = vmatprep.mubr.f32.mxu1 %v5869_v19 }
 0x18a   : > { %1920 = vmatmul.mubr.f32.gmra.mrb[12].mxu0 %v1713_v36 }
 0x18b   : > { %1925 = vmatprep.mubr.f32.mxu0 %v5869_v19 }
 0x18c   : > { %2081 = vmatmul.mubr.f32.gmra.mrb[12].mxu1 %v1713_v36 }
 0x18d   : > { %2086 = vmatprep.mubr.f32.mxu1 %v5869_v19 }
 0x18e   : > { %1926 = vmatmul.mubr.f32.gmra.mrb[14].mxu0 %v1714_v18 }
 0x18f   : > { %1931 = vmatprep.mubr.f32.mxu0 %v5869_v19 }
 0x190   : > { %2087 = vmatmul.mubr.f32.gmra.mrb[14].mxu1 %v1714_v18 }
 0x191   : > { %2092 = vmatprep.mubr.f32.mxu1 %v5869_v19 }
 0x192   : > { %1932 = vmatmul.mubr.f32.gmra.mrb[16].mxu0 %v1715_v63 }
 0x193   : > { %1937 = vmatprep.mubr.f32.mxu0 %v5869_v19 }
 0x194   : > { %2093 = vmatmul.mubr.f32.gmra.mrb[16].mxu1 %v1715_v63 }
 0x195   : > { %2098 = vmatprep.mubr.f32.mxu1 %v5869_v19 }
 0x196   : > { %1938 = vmatmul.mubr.f32.gmra.mrb[18].mxu0 %v1716_v26 }
 0x197   : > { %1943 = vmatprep.mubr.f32.mxu0 %v5869_v19 }
 0x198   : > { %2099 = vmatmul.mubr.f32.gmra.mrb[18].mxu1 %v1716_v26 }
 0x199   : > { %2104 = vmatprep.mubr.f32.mxu1 %v5869_v19 }
 0x19a   : > { %1944 = vmatmul.mubr.f32.gmra.mrb[20].mxu0 %v1717_v17 }
 0x19b   : > { %1949 = vmatprep.mubr.f32.mxu0 %v5869_v19 }
 0x19c   : > { %2105 = vmatmul.mubr.f32.gmra.mrb[20].mxu1 %v1717_v17 }
 0x19d   : > { %2110 = vmatprep.mubr.f32.mxu1 %v5869_v19 }
 0x19e   : > { %1950 = vmatmul.mubr.f32.gmra.mrb[22].mxu0 %v1718_v20 }
 0x19f   : > { %1955 = vmatprep.mubr.f32.mxu0 %v5869_v19 }
 0x1a0   : > { %2111 = vmatmul.mubr.f32.gmra.mrb[22].mxu1 %v1718_v20 }
 0x1a1   : > { %2116 = vmatprep.mubr.f32.mxu1 %v5869_v19 }
 0x1a2   : > { %1956 = vmatmul.mubr.f32.gmra.mrb[24].mxu0 %v1719_v29 }
 0x1a3   : > { %1961 = vmatprep.mubr.f32.mxu0 %v5869_v19 }
 0x1a4   : > { %2117 = vmatmul.mubr.f32.gmra.mrb[24].mxu1 %v1719_v29 }
 0x1a5   : > { %2122 = vmatprep.mubr.f32.mxu1 %v5869_v19 }
 0x1a6   : > { %1962 = vmatmul.mubr.f32.gmra.mrb[26].mxu0 %v1720_v47 }
 0x1a7   : > { %1967 = vmatprep.mubr.f32.mxu0 %v5869_v19 }
 0x1a8   : > { %2123 = vmatmul.mubr.f32.gmra.mrb[26].mxu1 %v1720_v47 }
 0x1a9   : > { %2128 = vmatprep.mubr.f32.mxu1 %v5869_v19 }
 0x1aa   : > { %1968 = vmatmul.mubr.f32.gmra.mrb[28].mxu0 %v1721_v59 }
 0x1ab   : > { %1973 = vmatprep.mubr.f32.mxu0 %v5869_v19 }
 0x1ac   : > { %2129 = vmatmul.mubr.f32.gmra.mrb[28].mxu1 %v1721_v59 }
 0x1ad   : > { %2134 = vmatprep.mubr.f32.mxu1 %v5869_v19 }
 0x1ae   : > { %1974 = vmatmul.mubr.f32.gmra.mrb[30].mxu0 %v1722_v25 }
 0x1af   : > { %2664 = vmatprep.mubr.f32.mxu0 %v5869_v19 }
 0x1b0   : > { %2135 = vmatmul.mubr.f32.gmra.mrb[30].mxu1 %v1722_v25 }
 0x1b1   : > { %2735 = vmatprep.mubr.f32.mxu1 %v5869_v19 }
 0x245   : > { %v1885_v58 = vpop.f32.mrb[0].mxu0 }
 0x246   : > { %v5187_v42 = vadd.f32 %v1885_v58, %v1742_v13  ;;  %v1887_v24 = vpop.f32.mrb[1].mxu0 }
 0x247   : > { %v2046_v46 = vpop.f32.mrb[0].mxu1  ;;  %v5189_v5 = vadd.f32 %v1887_v24, %v1742_v13 }
 0x248   : > { %v2937_v7 = vmul.f32 -1.442695, %v5187_v42  ;;  %v5192_v16 = vadd.f32 %v2046_v46, %v1742_v13  ;;  %v2048_v33 = vpop.f32.mrb[1].mxu1 }
 0x249   : > { %v2938_v34 = vmul.f32 -1.442695, %v5189_v5  ;;  %v5195_v39 = vadd.f32 %v2048_v33, %v1742_v13  ;;  %v1891_v57 = vpop.f32.mrb[2].mxu0 }
 0x24a   : > { %3435 = vpow2.f32 %v2937_v7  ;;  %v2939_v44 = vmul.f32 -1.442695, %v5192_v16  ;;  %v5198_v61 = vadd.f32 %v1891_v57, %v1747_v22  ;;  %v1893_v49 = vpop.f32.mrb[3].mxu0 }
 0x24b   : > { %3437 = vpow2.f32 %v2938_v34  ;;  %v2940_v12 = vmul.f32 -1.442695, %v5195_v39  ;;  %v2052_v41 = vpop.f32.mrb[2].mxu1  ;;  %v5201_v15 = vadd.f32 %v1893_v49, %v1747_v22 }
 0x24c   : > { %3439 = vpow2.f32 %v2939_v44  ;;  %v2941_v54 = vmul.f32 -1.442695, %v5198_v61  ;;  %v5204_v40 = vadd.f32 %v2052_v41, %v1747_v22  ;;  %v2054_v38 = vpop.f32.mrb[3].mxu1 }
 0x24d   : > { %3441 = vpow2.f32 %v2940_v12  ;;  %v2942_v6 = vmul.f32 -1.442695, %v5201_v15  ;;  %v5207_v0 = vadd.f32 %v2054_v38, %v1747_v22  ;;  %v1897_v8 = vpop.f32.mrb[4].mxu0 }
 0x24e   : > { %3443 = vpow2.f32 %v2941_v54  ;;  %v2943_v23 = vmul.f32 -1.442695, %v5204_v40  ;;  %v5210_v1 = vadd.f32 %v1897_v8, %v1752_v2  ;;  %v1899_v37 = vpop.f32.mrb[5].mxu0  ;;  %v1762_v54 = vpop.permute.xlu0 %1761 }
 0x24f   : > { %3445 = vpow2.f32 %v2942_v6  ;;  %v2944_v27 = vmul.f32 -1.442695, %v5207_v0  ;;  %v2058_v9 = vpop.f32.mrb[4].mxu1  ;;  %v5213_v56 = vadd.f32 %v1899_v37, %v1752_v2 }
 0x250   : > { %3447 = vpow2.f32 %v2943_v23  ;;  %v2945_v30 = vmul.f32 -1.442695, %v5210_v1  ;;  %v5216_v55 = vadd.f32 %v2058_v9, %v1752_v2  ;;  %v2060_v3 = vpop.f32.mrb[5].mxu1 }
 0x251   : > { %3449 = vpow2.f32 %v2944_v27  ;;  %v2946_v43 = vmul.f32 -1.442695, %v5213_v56  ;;  %v5219_v51 = vadd.f32 %v2060_v3, %v1752_v2  ;;  %v1903_v32 = vpop.f32.mrb[6].mxu0 }
 0x252   : > { %3451 = vpow2.f32 %v2945_v30  ;;  %v2947_v21 = vmul.f32 -1.442695, %v5216_v55  ;;  %v5222_v28 = vadd.f32 %v1903_v32, %v1757_v52  ;;  %v1905_v48 = vpop.f32.mrb[7].mxu0 }
 0x253   : > { %3453 = vpow2.f32 %v2946_v43  ;;  %v2948_v10 = vmul.f32 -1.442695, %v5219_v51  ;;  %v2064_v14 = vpop.f32.mrb[6].mxu1  ;;  %v5226_v13 = vadd.f32 %v1905_v48, %v1757_v52  ;;  %v1767_v43 = vpop.permute.xlu1 %1766 }
 0x254   : > { %v3436_v4 = vpop.eup %3435  ;;  %3455 = vpow2.f32 %v2947_v21  ;;  %v2949_v50 = vmul.f32 -1.442695, %v5222_v28  ;;  %v2066_v62 = vpop.f32.mrb[7].mxu1  ;;  %v5228_v7 = vadd.f32 %v2064_v14, %v1757_v52 }
 0x255   : > { %v3438_v35 = vpop.eup %3437  ;;  %v2333_v19 = vadd.f32 1.0, %v3436_v4  ;;  %3457 = vpow2.f32 %v2948_v10  ;;  %v1909_v31 = vpop.f32.mrb[8].mxu0  ;;  %v2950_v2 = vmul.f32 -1.442695, %v5226_v13  ;;  %v5231_v6 = vadd.f32 %v2066_v62, %v1757_v52 }
 0x256   : > { %v3440_v11 = vpop.eup %3439  ;;  %v2334_v53 = vadd.f32 1.0, %v3438_v35  ;;  %3459 = vpow2.f32 %v2949_v50  ;;  %v1911_v60 = vpop.f32.mrb[9].mxu0  ;;  %v2951_v27 = vmul.f32 -1.442695, %v5228_v7  ;;  %v5236_v9 = vadd.f32 %v1909_v31, %v1762_v54 }
 0x257   : > { %v3442_v45 = vpop.eup %3441  ;;  %3461 = vrcp.f32 %v2333_v19  ;;  %v2335_v36 = vadd.f32 1.0, %v3440_v11  ;;  %v2070_v18 = vpop.f32.mrb[8].mxu1  ;;  %v5240_v48 = vadd.f32 %v1911_v60, %v1762_v54  ;;  %v2952_v19 = vmul.f32 -1.442695, %v5231_v6 }
 0x258   : > { %v3444_v63 = vpop.eup %3443  ;;  %3463 = vrcp.f32 %v2334_v53  ;;  %v2336_v26 = vadd.f32 1.0, %v3442_v45  ;;  %v2072_v17 = vpop.f32.mrb[9].mxu1  ;;  %v5238_v21 = vadd.f32 %v2070_v18, %v1762_v54  ;;  %v2953_v53 = vmul.f32 -1.442695, %v5236_v9 }
 0x259   : > { %v3446_v20 = vpop.eup %3445  ;;  %3465 = vrcp.f32 %v2335_v36  ;;  %v2337_v29 = vadd.f32 1.0, %v3444_v63  ;;  %v1915_v47 = vpop.f32.mrb[10].mxu0  ;;  %v5244_v4 = vadd.f32 %v2072_v17, %v1762_v54  ;;  %v2954_v63 = vmul.f32 -1.442695, %v5240_v48 }
 0x25a   : > { %v3448_v59 = vpop.eup %3447  ;;  %3467 = vrcp.f32 %v2336_v26  ;;  %v2338_v25 = vadd.f32 1.0, %v3446_v20  ;;  %v1917_v58 = vpop.f32.mrb[11].mxu0  ;;  %v5246_v50 = vadd.f32 %v1915_v47, %v1767_v43  ;;  %v2955_v18 = vmul.f32 -1.442695, %v5238_v21 }
 0x25b   : > { %v3450_v24 = vpop.eup %3449  ;;  %3469 = vrcp.f32 %v2337_v29  ;;  %v2339_v46 = vadd.f32 1.0, %v3448_v59  ;;  %v2076_v33 = vpop.f32.mrb[10].mxu1  ;;  %v2956_v20 = vmul.f32 -1.442695, %v5244_v4  ;;  %v5264_v47 = vadd.f32 %v1917_v58, %v1767_v43 }
 0x25c   : > { %v3452_v22 = vpop.eup %3451  ;;  %3471 = vrcp.f32 %v2338_v25  ;;  %v2340_v34 = vadd.f32 1.0, %v3450_v24  ;;  %v2078_v57 = vpop.f32.mrb[11].mxu1  ;;  %v5254_v60 = vadd.f32 %v2076_v33, %v1767_v43  ;;  %v2957_v29 = vmul.f32 -1.442695, %v5246_v50 }
 0x25d   : > { %v3454_v44 = vpop.eup %3453  ;;  %3473 = vrcp.f32 %v2339_v46  ;;  %v2341_v49 = vadd.f32 1.0, %v3452_v22  ;;  %v1921_v12 = vpop.f32.mrb[12].mxu0  ;;  %v5276_v22 = vadd.f32 %v2078_v57, %v1767_v43 }
 0x25e   : > { %v3456_v41 = vpop.eup %3455  ;;  %3475 = vrcp.f32 %v2340_v34  ;;  %v2342_v38 = vadd.f32 1.0, %v3454_v44  ;;  %v5233_v8 = vpop.f32.mrb[13].mxu0  ;;  %v2959_v58 = vmul.f32 -1.442695, %v5254_v60 }
 0x25f   : > { %v3458_v23 = vpop.eup %3457  ;;  %3477 = vrcp.f32 %v2341_v49  ;;  %v2343_v37 = vadd.f32 1.0, %v3456_v41  ;;  %v2082_v30 = vpop.f32.mrb[12].mxu1 }
 0x260   : > { %v3460_v3 = vpop.eup %3459  ;;  %3479 = vrcp.f32 %v2342_v38  ;;  %v2344_v32 = vadd.f32 1.0, %v3458_v23  ;;  %v5242_v52 = vpop.f32.mrb[13].mxu1  ;;  %v2958_v23 = vmul.f32 -1.442695, %v5264_v47 }
 0x261   : > { %v3462_v10 = vpop.eup %3461  ;;  %3481 = vrcp.f32 %v2343_v37  ;;  %v2345_v14 = vadd.f32 1.0, %v3460_v3  ;;  %v5248_v62 = vpop.f32.mrb[14].mxu0 }
 0x262   : > { %v3464_v35 = vpop.eup %3463  ;;  %3483 = vrcp.f32 %v2344_v32  ;;  %v5251_v31 = vpop.f32.mrb[15].mxu0  ;;  %v5271_v46 = vmul.f32 %v3462_v10, %v5187_v42 }
 0x263   : > { %v3466_v11 = vpop.eup %3465  ;;  %3485 = vrcp.f32 %v2345_v14  ;;  %v5256_v45 = vpop.f32.mrb[14].mxu1 }
 0x264   : > { %v3468_v36 = vpop.eup %3467  ;;  %3487 = vpow2.f32 %v2951_v27  ;;  %v5260_v26 = vpop.f32.mrb[15].mxu1 }
 0x265   : > { %v3470_v17 = vpop.eup %3469  ;;  %3489 = vpow2.f32 %v2950_v2  ;;  %v5266_v59 = vpop.f32.mrb[16].mxu0 }
 0x266   : > { %v3472_v25 = vpop.eup %3471  ;;  %v5268_v24 = vpop.permute.xlu0 %1771  ;;  %v5274_v33 = vmul.f32 %v3470_v17, %v5198_v61  ;;  %3491 = vpow2.f32 %v2952_v19  ;;  %v5290_v61 = vmul.f32 %v3466_v11, %v5192_v16 }
 0x267   : > { %v5278_v34 = vpop.f32.mrb[17].mxu0  ;;  %v3474_v44 = vpop.eup %3473  ;;  %3493 = vpow2.f32 %v2953_v53  ;;  %v5282_v49 = vadd.f32 %v1921_v12, %v5268_v24  ;;  %v5285_v41 = vadd.f32 %v2082_v30, %v5268_v24  ;;  %v2960_v30 = vmul.f32 -1.442695, %v5276_v22 }
 0x268   : > { %v5287_v42 = vpop.f32.mrb[16].mxu1  ;;  %v3476_v54 = vpop.eup %3475  ;;  %v3073_v57 = vpack.c.bf16 %v5274_v33, %v5271_v46  ;;  %v5295_v38 = vmul.f32 %v3474_v44, %v5204_v40  ;;  %3495 = vpow2.f32 %v2955_v18  ;;  %v2530_v43 = vmul.f32 %v3472_v25, %v5201_v15 }
 0x269   : > { %v5297_v2 = vpop.f32.mrb[17].mxu1  ;;  %v3478_v12 = vpop.eup %3477  ;;  %3497 = vpow2.f32 %v2954_v63  ;;  %v2961_v32 = vmul.f32 -1.442695, %v5282_v49  ;;  %v2963_v19 = vmul.f32 -1.442695, %v5285_v41  ;;  %v2526_v18 = vmul.f32 %v3464_v35, %v5189_v5 }
 0x26a   : > { %v5300_v37 = vpop.f32.mrb[18].mxu0  ;;  %v5302_v27 = vpop.eup %3479  ;;  %v3105_v16 = vpack.c.bf16 %v5295_v38, %v5290_v61  ;;  %3499 = vpow2.f32 %v2956_v20  ;;  %v2532_v63 = vmul.f32 %v3476_v54, %v5207_v0  ;;  %v5325_v20 = vmul.f32 %v3478_v12, %v5210_v1 }
 0x26b   : > { %v5307_v3 = vpop.f32.mrb[19].mxu0  ;;  %v5309_v40 = vpop.eup %3481  ;;  %3501 = vpow2.f32 %v2957_v29  ;;  %v2528_v33 = vmul.f32 %v3468_v36, %v5195_v39  ;;  %v3071_v5 = vpack.c.bf16 %v2530_v43, %v2526_v18 }
 0x26c   : > { %v5313_v10 = vpop.f32.mrb[18].mxu1  ;;  %v5315_v14 = vpop.eup %3483  ;;  %3503 = vpow2.f32 %v2959_v58 }
 0x26d   : > { %v5318_v11 = vpop.f32.mrb[19].mxu1  ;;  %v3486_v53 = vpop.eup %3485  ;;  %3505 = vpow2.f32 %v2958_v23  ;;  %3072 = vmatprep.subr.bf16.mxu0 %v3071_v5  ;;  %v3103_v38 = vpack.c.bf16 %v2532_v63, %v2528_v33 }
 0x26e   : > { %v5322_v17 = vpop.f32.mrb[20].mxu0  ;;  %v3488_v15 = vpop.eup %3487  ;;  %v5328_v29 = vmul.f32 %v3486_v53, %v5222_v28  ;;  %3507 = vpow2.f32 %v2960_v30  ;;  %3074 = vmatpush1.bf16.msra.mxu0 %v3073_v57 }
 0x26f   : > { %v5330_v25 = vpop.f32.mrb[21].mxu0  ;;  %v3490_v46 = vpop.eup %3489  ;;  %v2347_v44 = vadd.f32 1.0, %v3488_v15  ;;  %3509 = vpow2.f32 %v2961_v32  ;;  %3104 = vmatprep.subr.bf16.mxu1 %v3103_v38  ;;  %v5351_v15 = vadd.f32 %v5242_v52, %v5268_v24 }
 0x270   : > { %v5333_v0 = vpop.f32.mrb[20].mxu1  ;;  %v3492_v35 = vpop.eup %3491  ;;  %v2346_v1 = vadd.f32 1.0, %v3490_v46  ;;  %3511 = vpow2.f32 %v2963_v19  ;;  %v5345_v19 = vadd.f32 %v5233_v8, %v5268_v24  ;;  %3106 = vmatpush1.bf16.msra.mxu1 %v3105_v16 }
 0x271   : > { %v5337_v54 = vpop.f32.mrb[21].mxu1  ;;  %v3494_v28 = vpop.eup %3493  ;;  %3513 = vrcp.f32 %v2347_v44  ;;  %v2348_v61 = vadd.f32 1.0, %v3492_v35  ;;  %5870 = vst [vmem:[#allocation28_spill] sm:$0xff] %v5351_v15 }
 0x272   : > { %v5339_v12 = vpop.f32.mrb[22].mxu0  ;;  %v3496_v39 = vpop.eup %3495  ;;  %3515 = vrcp.f32 %v2346_v1  ;;  %v2349_v36 = vadd.f32 1.0, %v3494_v28  ;;  %v2962_v28 = vmul.f32 -1.442695, %v5345_v19 }
 0x273   : > { %v5341_v23 = vpop.f32.mrb[23].mxu0  ;;  %v3498_v30 = vpop.eup %3497  ;;  %3517 = vrcp.f32 %v2348_v61  ;;  %v2351_v32 = vadd.f32 1.0, %v3496_v39  ;;  %v2964_v39 = vmul.f32 -1.442695, %v5351_v15 }
 0x274   : > { %v1777_v43 = vpop.permute.xlu1 %1776  ;;  %v5347_v53 = vpop.f32.mrb[22].mxu1  ;;  %3519 = vrcp.f32 %v2349_v36  ;;  %v2350_v63 = vadd.f32 1.0, %v3498_v30 }
 0x275   : > { %v3500_v18 = vpop.eup %3499  ;;  %v5354_v57 = vadd.f32 %v5248_v62, %v1777_v43  ;;  %v5356_v46 = vpop.f32.mrb[23].mxu1  ;;  %3521 = vrcp.f32 %v2351_v32  ;;  %v5359_v44 = vadd.f32 %v5251_v31, %v1777_v43  ;;  %v5364_v52 = vadd.f32 %v5256_v45, %v1777_v43 }
 0x276   : > { %v3502_v33 = vpop.eup %3501  ;;  %v2352_v8 = vadd.f32 1.0, %v3500_v18  ;;  %v5361_v5 = vpop.f32.mrb[24].mxu0  ;;  %3523 = vrcp.f32 %v2350_v63 }
 0x277   : > { %v3504_v35 = vpop.eup %3503  ;;  %v2353_v1 = vadd.f32 1.0, %v3502_v33  ;;  %v5366_v24 = vpop.f32.mrb[25].mxu0  ;;  %v2965_v36 = vmul.f32 -1.442695, %v5354_v57  ;;  %v2966_v63 = vmul.f32 -1.442695, %v5359_v44  ;;  %v5377_v33 = vadd.f32 %v5260_v26, %v1777_v43 }
 0x278   : > { %v3506_v62 = vpop.eup %3505  ;;  %3525 = vrcp.f32 %v2352_v8  ;;  %v2355_v16 = vadd.f32 1.0, %v3504_v35  ;;  %v5369_v61 = vpop.f32.mrb[24].mxu1 }
 0x279   : > { %v3508_v38 = vpop.eup %3507  ;;  %3527 = vrcp.f32 %v2353_v1  ;;  %v2354_v31 = vadd.f32 1.0, %v3506_v62  ;;  %v5373_v30 = vpop.f32.mrb[25].mxu1  ;;  %v2967_v62 = vmul.f32 -1.442695, %v5364_v52 }
 0x27a   : > { %5871 = vst [vmem:[#allocation34_spill] sm:$0xff] %v5373_v30  ;;  %v3510_v45 = vpop.eup %3509  ;;  %v1782_v32 = vpop.permute.xlu0 %1781  ;;  %3529 = vrcp.f32 %v2355_v16  ;;  %v2356_v18 = vadd.f32 1.0, %v3508_v38 }
 0x27b   : > { %v5379_v8 = vpop.f32.mrb[26].mxu0  ;;  %v3512_v35 = vpop.eup %3511  ;;  %3531 = vrcp.f32 %v2354_v31  ;;  %v2357_v1 = vadd.f32 1.0, %v3510_v45  ;;  %v5383_v58 = vadd.f32 %v5266_v59, %v1782_v32  ;;  %v5388_v38 = vadd.f32 %v5287_v42, %v1782_v32 }
 0x27c   : > { %5872 = vst [vmem:[#allocation30_spill] sm:$0xff] %v5379_v8  ;;  %v5385_v30 = vpop.f32.mrb[27].mxu0  ;;  %v3514_v15 = vpop.eup %3513  ;;  %3533 = vrcp.f32 %v2356_v18  ;;  %v2359_v16 = vadd.f32 1.0, %v3512_v35  ;;  %v5391_v26 = vadd.f32 %v5278_v34, %v1782_v32  ;;  %v2535_v59 = vmul.f32 %v5309_v40, %v5216_v55 }
 0x27d   : > { %5873 = vst [vmem:[#allocation31_spill] sm:$0xff] %v5385_v30  ;;  %v5393_v43 = vpop.f32.mrb[26].mxu1  ;;  %v3516_v31 = vpop.eup %3515  ;;  %v2539_v8 = vmul.f32 %v3514_v15, %v5228_v7  ;;  %3535 = vrcp.f32 %v2357_v1  ;;  %v5401_v18 = vadd.f32 %v5297_v2, %v1782_v32  ;;  %v2534_v34 = vmul.f32 %v5302_v27, %v5213_v56 }
 0x27e   : > { %5874 = vst [vmem:[#allocation27_spill] sm:$0xff] %v5393_v43  ;;  %v5395_v45 = vpop.permute.xlu1 %1786  ;;  %v5403_v35 = vpop.f32.mrb[27].mxu1  ;;  %v2538_v30 = vmul.f32 %v3516_v31, %v5226_v13  ;;  %3537 = vrcp.f32 %v2359_v16  ;;  %v2536_v2 = vmul.f32 %v5315_v14, %v5219_v51  ;;  %v2968_v13 = vmul.f32 -1.442695, %v5377_v33 }
 0x27f   : > { %v3518_v42 = vpop.eup %3517  ;;  %v5410_v43 = vadd.f32 %v5300_v37, %v5395_v45  ;;  %v5412_v55 = vpop.f32.mrb[28].mxu0  ;;  %v3109_v40 = vpack.c.bf16 %v2539_v8, %v2535_v59  ;;  %3539 = vpow2.f32 %v2962_v28  ;;  %v5422_v37 = vadd.f32 %v5313_v10, %v5395_v45 }
 0x280   : > { %v3520_v7 = vpop.eup %3519  ;;  %v2540_v15 = vmul.f32 %v3518_v42, %v5231_v6  ;;  %v5417_v32 = vpop.f32.mrb[29].mxu0  ;;  %3541 = vpow2.f32 %v2964_v39  ;;  %v3075_v27 = vpack.c.bf16 %v2538_v30, %v2534_v34  ;;  %v2969_v51 = vmul.f32 -1.442695, %v5383_v58 }
 0x281   : > { %v3522_v56 = vpop.eup %3521  ;;  %v5424_v1 = vpop.f32.mrb[28].mxu1  ;;  %3543 = vpow2.f32 %v2965_v36  ;;  %v5429_v6 = vadd.f32 %v5307_v3, %v5395_v45  ;;  %v2971_v8 = vmul.f32 -1.442695, %v5388_v38  ;;  %v2970_v10 = vmul.f32 -1.442695, %v5391_v26 }
 0x282   : > { %v3524_v16 = vpop.eup %3523  ;;  %v3107_v14 = vpack.c.bf16 %v2540_v15, %v2536_v2  ;;  %v5431_v28 = vpop.f32.mrb[29].mxu1  ;;  %3545 = vpow2.f32 %v2967_v62  ;;  %3076 = vmatprep.subr.bf16.mxu0 %v3075_v27  ;;  %v2972_v36 = vmul.f32 -1.442695, %v5401_v18  ;;  %v2973_v59 = vmul.f32 -1.442695, %v5410_v43 }
 0x283   : > { %v3526_v39 = vpop.eup %3525  ;;  %v5435_v30 = vpop.f32.mrb[30].mxu0  ;;  %3547 = vpow2.f32 %v2966_v63  ;;  %v5876_v3 = vpack.c.bf16 %v5328_v29, %v5325_v20  ;;  %v2541_v34 = vmul.f32 %v3520_v7, %v5236_v9  ;;  %v2975_v15 = vmul.f32 -1.442695, %v5422_v37 }
 0x284   : > { %5875 = vst [vmem:[#allocation18_spill] sm:$0xff] %v5435_v30  ;;  %v3528_v31 = vpop.eup %3527  ;;  %3108 = vmatprep.subr.bf16.mxu1 %v3107_v14  ;;  %v5442_v42 = vpop.f32.mrb[31].mxu0  ;;  %3549 = vpow2.f32 %v2968_v13  ;;  %v2543_v14 = vmul.f32 %v3522_v56, %v5238_v21  ;;  %v2974_v20 = vmul.f32 -1.442695, %v5429_v6  ;;  %v2542_v9 = vmul.f32 %v3524_v16, %v5240_v48 }
 0x285   : > { %3078 = vmatpush1.bf16.msra.mxu0 %v5876_v3  ;;  %v3530_v62 = vpop.eup %3529  ;;  %v2545_v2 = vmul.f32 %v3528_v31, %v5246_v50  ;;  %3110 = vmatpush1.bf16.msra.mxu1 %v3109_v40  ;;  %v5447_v63 = vpop.f32.mrb[30].mxu1  ;;  %3551 = vpow2.f32 %v2969_v51  ;;  %v2544_v13 = vmul.f32 %v3526_v39, %v5244_v4 }
 0x286   : > { %v3532_v27 = vpop.eup %3531  ;;  %v2547_v30 = vmul.f32 %v3530_v62, %v5254_v60  ;;  %v5452_v29 = vpop.f32.mrb[31].mxu1  ;;  %3553 = vpow2.f32 %v2971_v8 }
 0x287   : > { %v3534_v3 = vpop.eup %3533  ;;  %v3081_v50 = vpack.c.bf16 %v2545_v2, %v2541_v34  ;;  %v2546_v7 = vmul.f32 %v3532_v27, %v5264_v47  ;;  %3555 = vpow2.f32 %v2970_v10 }
 0x288   : > { %v5456_v40 = vpop.eup %3535  ;;  %v3113_v31 = vpack.c.bf16 %v2547_v30, %v2543_v14  ;;  %v2548_v21 = vmul.f32 %v3534_v3, %v5276_v22  ;;  %3557 = vpow2.f32 %v2972_v36  ;;  %v5464_v3 = vadd.f32 %v5318_v11, %v5395_v45 }
 0x289   : > { %v5460_v60 = vpop.eup %3537  ;;  %v3079_v56 = vpack.c.bf16 %v2546_v7, %v2542_v9  ;;  %3559 = vpow2.f32 %v2973_v59  ;;  %v1797_v7 = vpop.permute.xlu1 %1796 }
 0x28a   : > { %v3540_v51 = vpop.eup %3539  ;;  %v3111_v62 = vpack.c.bf16 %v2548_v21, %v2544_v13  ;;  %3561 = vpow2.f32 %v2975_v15  ;;  %v1792_v15 = vpop.permute.xlu0 %1791  ;;  %v5479_v11 = vadd.f32 %v5339_v12, %v1797_v7 }
 0x28b   : > { %v3542_v48 = vpop.eup %3541  ;;  %v2358_v16 = vadd.f32 1.0, %v3540_v51  ;;  %3080 = vmatprep.subr.bf16.mxu0 %v3079_v56  ;;  %3563 = vpow2.f32 %v2974_v20  ;;  %v5467_v9 = vadd.f32 %v5322_v17, %v1792_v15  ;;  %v5473_v21 = vadd.f32 %v5330_v25, %v1792_v15 }
 0x28c   : > { %v3544_v47 = vpop.eup %3543  ;;  %v2360_v8 = vadd.f32 1.0, %v3542_v48  ;;  %3112 = vmatprep.subr.bf16.mxu1 %v3111_v62  ;;  %3082 = vmatpush1.bf16.msra.mxu0 %v3081_v50  ;;  %v5476_v62 = vadd.f32 %v5337_v54, %v1792_v15  ;;  %v5482_v48 = vadd.f32 %v5347_v53, %v1797_v7 }
 0x28d   : > { %v3546_v4 = vpop.eup %3545  ;;  %3565 = vrcp.f32 %v2358_v16  ;;  %v2361_v22 = vadd.f32 1.0, %v3544_v47  ;;  %3114 = vmatpush1.bf16.msra.mxu1 %v3113_v31  ;;  %v5470_v31 = vadd.f32 %v5333_v0, %v1792_v15  ;;  %v5485_v0 = vadd.f32 %v5341_v23, %v1797_v7 }
 0x28e   : > { %v3548_v39 = vpop.eup %3547  ;;  %3567 = vrcp.f32 %v2360_v8  ;;  %v2363_v10 = vadd.f32 1.0, %v3546_v4  ;;  %v2976_v47 = vmul.f32 -1.442695, %v5464_v3  ;;  %v2977_v54 = vmul.f32 -1.442695, %v5467_v9  ;;  %v1802_v53 = vpop.permute.xlu0 %1801 }
 0x28f   : > { %v3550_v30 = vpop.eup %3549  ;;  %3569 = vrcp.f32 %v2361_v22  ;;  %v2362_v36 = vadd.f32 1.0, %v3548_v39  ;;  %v2979_v4 = vmul.f32 -1.442695, %v5470_v31  ;;  %v2978_v22 = vmul.f32 -1.442695, %v5473_v21 }
 0x290   : > { %v3552_v59 = vpop.eup %3551  ;;  %3571 = vrcp.f32 %v2363_v10  ;;  %v2364_v34 = vadd.f32 1.0, %v3550_v30  ;;  %v2980_v23 = vmul.f32 -1.442695, %v5476_v62  ;;  %v2981_v10 = vmul.f32 -1.442695, %v5479_v11 }
 0x291   : > { %v3554_v2 = vpop.eup %3553  ;;  %3573 = vrcp.f32 %v2362_v36  ;;  %v2365_v27 = vadd.f32 1.0, %v3552_v59  ;;  %v5494_v30 = vadd.f32 %v5356_v46, %v1797_v7  ;;  %v2983_v59 = vmul.f32 -1.442695, %v5482_v48 }
 0x292   : > { %v3556_v14 = vpop.eup %3555  ;;  %3575 = vrcp.f32 %v2364_v34  ;;  %v2367_v20 = vadd.f32 1.0, %v3554_v2  ;;  %v2982_v34 = vmul.f32 -1.442695, %v5485_v0  ;;  %v5499_v2 = vadd.f32 %v5361_v5, %v1802_v53 }
 0x293   : > { %v3558_v50 = vpop.eup %3557  ;;  %3577 = vrcp.f32 %v2365_v27  ;;  %v2366_v13 = vadd.f32 1.0, %v3556_v14  ;;  %v2549_v27 = vmul.f32 %v5456_v40, %v5282_v49  ;;  %v5511_v5 = vadd.f32 %v5366_v24, %v1802_v53  ;;  %v5878_v24 = vld [vmem:[#allocation34_spill] sm:$0xff] }
 0x294   : > { %v3560_v56 = vpop.eup %3559  ;;  %3579 = vrcp.f32 %v2367_v20  ;;  %v2368_v51 = vadd.f32 1.0, %v3558_v50  ;;  %v5505_v20 = vadd.f32 %v5369_v61, %v1802_v53  ;;  %v2551_v50 = vmul.f32 %v5460_v60, %v5285_v41  ;;  %v5877_v61 = vld [vmem:[#allocation28_spill] sm:$0xff] }
 0x295   : > { %v3562_v17 = vpop.eup %3561  ;;  %3581 = vrcp.f32 %v2366_v13  ;;  %v2369_v45 = vadd.f32 1.0, %v3560_v56  ;;  %v5519_v60 = vadd.f32 %v5878_v24, %v1802_v53 }
 0x296   : > { %v3564_v25 = vpop.eup %3563  ;;  %3583 = vrcp.f32 %v2368_v51  ;;  %v2371_v16 = vadd.f32 1.0, %v3562_v17 }
 0x297   : > { %v3566_v8 = vpop.eup %3565  ;;  %3585 = vrcp.f32 %v2369_v45  ;;  %v2370_v12 = vadd.f32 1.0, %v3564_v25 }
 0x298   : > { %v3568_v39 = vpop.eup %3567  ;;  %3587 = vrcp.f32 %v2371_v16  ;;  %v2550_v56 = vmul.f32 %v3566_v8, %v5345_v19  ;;  %v2986_v8 = vmul.f32 -1.442695, %v5511_v5 }
 0x299   : > { %v3570_v36 = vpop.eup %3569  ;;  %3589 = vrcp.f32 %v2370_v12  ;;  %v2552_v51 = vmul.f32 %v3568_v39, %v5877_v61  ;;  %v2988_v39 = vmul.f32 -1.442695, %v5519_v60 }
 0x29a   : > { %v3572_v15 = vpop.eup %3571  ;;  %v2553_v14 = vmul.f32 %v3570_v36, %v5354_v57  ;;  %3591 = vpow2.f32 %v2976_v47 }
 0x29b   : > { %v3574_v46 = vpop.eup %3573  ;;  %v2555_v7 = vmul.f32 %v3572_v15, %v5364_v52  ;;  %3593 = vpow2.f32 %v2977_v54  ;;  %v2984_v52 = vmul.f32 -1.442695, %v5494_v30  ;;  %v2987_v54 = vmul.f32 -1.442695, %v5505_v20 }
 0x29c   : > { %v3576_v13 = vpop.eup %3575  ;;  %v3085_v49 = vpack.c.bf16 %v2553_v14, %v2549_v27  ;;  %v2554_v57 = vmul.f32 %v3574_v46, %v5359_v44  ;;  %3595 = vpow2.f32 %v2979_v4  ;;  %v2985_v44 = vmul.f32 -1.442695, %v5499_v2 }
 0x29d   : > { %v3578_v40 = vpop.eup %3577  ;;  %v3117_v17 = vpack.c.bf16 %v2555_v7, %v2551_v50  ;;  %v2556_v45 = vmul.f32 %v3576_v13, %v5377_v33  ;;  %3597 = vpow2.f32 %v2978_v22 }
 0x29e   : > { %v3580_v41 = vpop.eup %3579  ;;  %3599 = vpow2.f32 %v2980_v23  ;;  %v3083_v25 = vpack.c.bf16 %v2554_v57, %v2550_v56  ;;  %v2557_v4 = vmul.f32 %v3578_v40, %v5383_v58 }
 0x29f   : > { %v3582_v19 = vpop.eup %3581  ;;  %3601 = vpow2.f32 %v2981_v10  ;;  %v3115_v16 = vpack.c.bf16 %v2556_v45, %v2552_v51  ;;  %v5530_v23 = vmul.f32 %v3580_v41, %v5388_v38  ;;  %v5879_v51 = vld [vmem:[#allocation30_spill] sm:$0xff] }
 0x2a0   : > { %v5522_v47 = vpop.eup %3583  ;;  %3603 = vpow2.f32 %v2983_v59  ;;  %3084 = vmatprep.subr.bf16.mxu0 %v3083_v25  ;;  %v2558_v59 = vmul.f32 %v3582_v19, %v5391_v26 }
 0x2a1   : > { %v3586_v33 = vpop.eup %3585  ;;  %3605 = vpow2.f32 %v2982_v34  ;;  %3116 = vmatprep.subr.bf16.mxu1 %v3115_v16  ;;  %3086 = vmatpush1.bf16.msra.mxu0 %v3085_v49  ;;  %v1807_v49 = vpop.permute.xlu1 %1806 }
 0x2a2   : > { %v3588_v12 = vpop.eup %3587  ;;  %v2561_v22 = vmul.f32 %v3586_v33, %v5410_v43  ;;  %3607 = vpow2.f32 %v2984_v52  ;;  %3118 = vmatpush1.bf16.msra.mxu1 %v3117_v17  ;;  %v5540_v17 = vadd.f32 %v5879_v51, %v1807_v49  ;;  %v5880_v52 = vld [vmem:[#allocation27_spill] sm:$0xff] }
 0x2a3   : > { %v3590_v53 = vpop.eup %3589  ;;  %v5533_v10 = vmul.f32 %v3588_v12, %v5422_v37  ;;  %3609 = vpow2.f32 %v2985_v44  ;;  %v5543_v24 = vadd.f32 %v5880_v52, %v1807_v49  ;;  %v5881_v44 = vld [vmem:[#allocation31_spill] sm:$0xff]  ;;  %v1812_v12 = vpop.permute.xlu0 %1811 }
 0x2a4   : > { %v3592_v36 = vpop.eup %3591  ;;  %v3089_v34 = vpack.c.bf16 %v2561_v22, %v2557_v4  ;;  %v2562_v58 = vmul.f32 %v3590_v53, %v5429_v6  ;;  %3611 = vpow2.f32 %v2987_v54  ;;  %v5546_v16 = vadd.f32 %v5881_v44, %v1807_v49 }
 0x2a5   : > { %v3594_v43 = vpop.eup %3593  ;;  %v3121_v15 = vpack.c.bf16 %v5533_v10, %v5530_v23  ;;  %v2372_v27 = vadd.f32 1.0, %v3592_v36  ;;  %3613 = vpow2.f32 %v2986_v8  ;;  %v2989_v22 = vmul.f32 -1.442695, %v5540_v17 }
 0x2a6   : > { %v3596_v14 = vpop.eup %3595  ;;  %v2373_v38 = vadd.f32 1.0, %v3594_v43  ;;  %3615 = vpow2.f32 %v2988_v39  ;;  %v3087_v46 = vpack.c.bf16 %v2562_v58, %v2558_v59  ;;  %v5550_v39 = vadd.f32 %v5403_v35, %v1807_v49 }
 0x2a7   : > { %v3598_v37 = vpop.eup %3597  ;;  %3617 = vrcp.f32 %v2372_v27  ;;  %v2375_v50 = vadd.f32 1.0, %v3596_v14  ;;  %v2991_v59 = vmul.f32 -1.442695, %v5543_v24  ;;  %v5557_v58 = vadd.f32 %v5424_v1, %v1812_v12  ;;  %v1817_v27 = vpop.permute.xlu1 %1816  ;;  %v5882_v1 = vld [vmem:[#allocation18_spill] sm:$0xff] }
 0x2a8   : > { %v3600_v7 = vpop.eup %3599  ;;  %3619 = vrcp.f32 %v2373_v38  ;;  %v2374_v26 = vadd.f32 1.0, %v3598_v37  ;;  %3088 = vmatprep.subr.bf16.mxu0 %v3087_v46  ;;  %v2990_v14 = vmul.f32 -1.442695, %v5546_v16  ;;  %v5561_v38 = vadd.f32 %v5417_v32, %v1812_v12 }
 0x2a9   : > { %v3602_v13 = vpop.eup %3601  ;;  %3621 = vrcp.f32 %v2375_v50  ;;  %v2376_v6 = vadd.f32 1.0, %v3600_v7  ;;  %3090 = vmatpush1.bf16.msra.mxu0 %v3089_v34  ;;  %v5554_v34 = vadd.f32 %v5412_v55, %v1812_v12  ;;  %v5564_v35 = vadd.f32 %v5431_v28, %v1812_v12 }
 0x2aa   : > { %v3604_v56 = vpop.eup %3603  ;;  %3623 = vrcp.f32 %v2374_v26  ;;  %v2377_v57 = vadd.f32 1.0, %v3602_v13  ;;  %v2560_v37 = vmul.f32 %v5522_v47, %v5401_v18  ;;  %v5570_v50 = vadd.f32 %v5882_v1, %v1817_v27 }
 0x2ab   : > { %v3606_v40 = vpop.eup %3605  ;;  %3625 = vrcp.f32 %v2376_v6  ;;  %v2379_v61 = vadd.f32 1.0, %v3604_v56  ;;  %v2992_v26 = vmul.f32 -1.442695, %v5550_v39  ;;  %v5574_v32 = vadd.f32 %v5447_v63, %v1817_v27 }
 0x2ac   : > { %v3608_v45 = vpop.eup %3607  ;;  %3627 = vrcp.f32 %v2377_v57  ;;  %v2378_v41 = vadd.f32 1.0, %v3606_v40  ;;  %v2993_v28 = vmul.f32 -1.442695, %v5554_v34  ;;  %v5578_v6 = vadd.f32 %v5442_v42, %v1817_v27 }
 0x2ad   : > { %v3610_v25 = vpop.eup %3609  ;;  %3629 = vrcp.f32 %v2379_v61  ;;  %v2380_v19 = vadd.f32 1.0, %v3608_v45  ;;  %v2995_v47 = vmul.f32 -1.442695, %v5557_v58  ;;  %v2994_v56 = vmul.f32 -1.442695, %v5561_v38 }
 0x2ae   : > { %v3612_v54 = vpop.eup %3611  ;;  %3631 = vrcp.f32 %v2378_v41  ;;  %v2381_v33 = vadd.f32 1.0, %v3610_v25  ;;  %v2996_v57 = vmul.f32 -1.442695, %v5564_v35  ;;  %v2997_v63 = vmul.f32 -1.442695, %v5570_v50 }
 0x2af   : > { %v3614_v8 = vpop.eup %3613  ;;  %3633 = vrcp.f32 %v2380_v19  ;;  %v2383_v4 = vadd.f32 1.0, %v3612_v54  ;;  %v5585_v40 = vadd.f32 %v5452_v29, %v1817_v27  ;;  %v2999_v45 = vmul.f32 -1.442695, %v5574_v32 }
 0x2b0   : > { %v3616_v53 = vpop.eup %3615  ;;  %v2382_v36 = vadd.f32 1.0, %v3614_v8  ;;  %3635 = vrcp.f32 %v2381_v33  ;;  %v2998_v29 = vmul.f32 -1.442695, %v5578_v6 }
 0x2b1   : > { %v3618_v43 = vpop.eup %3617  ;;  %3637 = vrcp.f32 %v2383_v4  ;;  %v2384_v8 = vadd.f32 1.0, %v3616_v53 }
 0x2b2   : > { %v3620_v46 = vpop.eup %3619  ;;  %v2564_v55 = vmul.f32 %v3618_v43, %v5464_v3  ;;  %3639 = vrcp.f32 %v2382_v36 }
 0x2b3   : > { %v3622_v7 = vpop.eup %3621  ;;  %3641 = vpow2.f32 %v2989_v22  ;;  %v2565_v42 = vmul.f32 %v3620_v46, %v5467_v9 }
 0x2b4   : > { %v3624_v13 = vpop.eup %3623  ;;  %v3119_v18 = vpack.c.bf16 %v2564_v55, %v2560_v37  ;;  %3643 = vpow2.f32 %v2991_v59  ;;  %v2567_v52 = vmul.f32 %v3622_v7, %v5470_v31  ;;  %v3000_v31 = vmul.f32 -1.442695, %v5585_v40 }
 0x2b5   : > { %v3626_v3 = vpop.eup %3625  ;;  %3645 = vpow2.f32 %v2990_v14  ;;  %v2566_v9 = vmul.f32 %v3624_v13, %v5473_v21 }
 0x2b6   : > { %v3628_v49 = vpop.eup %3627  ;;  %3120 = vmatprep.subr.bf16.mxu1 %v3119_v18  ;;  %3647 = vpow2.f32 %v2992_v26  ;;  %v2568_v54 = vmul.f32 %v3626_v3, %v5476_v62 }
 0x2b7   : > { %v3630_v61 = vpop.eup %3629  ;;  %v2569_v51 = vmul.f32 %v3628_v49, %v5479_v11  ;;  %3122 = vmatpush1.bf16.msra.mxu1 %v3121_v15  ;;  %3649 = vpow2.f32 %v2993_v28 }
 0x2b8   : > { %v3632_v41 = vpop.eup %3631  ;;  %v2571_v25 = vmul.f32 %v3630_v61, %v5482_v48  ;;  %3651 = vpow2.f32 %v2995_v47 }
 0x2b9   : > { %v3634_v19 = vpop.eup %3633  ;;  %v3093_v44 = vpack.c.bf16 %v2569_v51, %v2565_v42  ;;  %v2570_v11 = vmul.f32 %v3632_v41, %v5485_v0  ;;  %3653 = vpow2.f32 %v2994_v56 }
 0x2ba   : > { %v3125_v33 = vpack.c.bf16 %v2571_v25, %v2567_v52  ;;  %v2572_v23 = vmul.f32 %v3634_v19, %v5494_v30  ;;  %v3636_v10 = vpop.eup %3635  ;;  %3655 = vpow2.f32 %v2996_v57 }
 0x2bb   : > { %v3091_v48 = vpack.c.bf16 %v2570_v11, %v2566_v9  ;;  %v3638_v15 = vpop.eup %3637  ;;  %3657 = vpow2.f32 %v2997_v63  ;;  %v2573_v42 = vmul.f32 %v3636_v10, %v5499_v2 }
 0x2bc   : > { %v3123_v12 = vpack.c.bf16 %v2572_v23, %v2568_v54  ;;  %v3640_v21 = vpop.eup %3639  ;;  %3659 = vpow2.f32 %v2999_v45  ;;  %v2575_v41 = vmul.f32 %v3638_v15, %v5505_v20 }
 0x2bd   : > { %3092 = vmatprep.subr.bf16.mxu0 %v3091_v48  ;;  %v3642_v0 = vpop.eup %3641  ;;  %3661 = vpow2.f32 %v2998_v29  ;;  %v2574_v29 = vmul.f32 %v3640_v21, %v5511_v5 }
 0x2be   : > { %3124 = vmatprep.subr.bf16.mxu1 %v3123_v12  ;;  %3094 = vmatpush1.bf16.msra.mxu0 %v3093_v44  ;;  %v3644_v62 = vpop.eup %3643  ;;  %v2385_v4 = vadd.f32 1.0, %v3642_v0  ;;  %3663 = vpow2.f32 %v3000_v31 }
 0x2bf   : > { %3126 = vmatpush1.bf16.msra.mxu1 %v3125_v33  ;;  %v3646_v30 = vpop.eup %3645  ;;  %3665 = vrcp.f32 %v2384_v8  ;;  %v2387_v22 = vadd.f32 1.0, %v3644_v62 }
 0x2c0   : > { %v3648_v36 = vpop.eup %3647  ;;  %3667 = vrcp.f32 %v2385_v4  ;;  %v2386_v59 = vadd.f32 1.0, %v3646_v30  ;;  %v5883_v30 = vld [vmem:[#allocation7_spill] sm:$0xff] }
 0x2c1   : > { %v3650_v53 = vpop.eup %3649  ;;  %3669 = vrcp.f32 %v2387_v22  ;;  %v2388_v43 = vadd.f32 1.0, %v3648_v36 }
 0x2c2   : > { %v3652_v27 = vpop.eup %3651  ;;  %3671 = vrcp.f32 %v2386_v59  ;;  %v2389_v14 = vadd.f32 1.0, %v3650_v53 }
 0x2c3   : > { %v3654_v46 = vpop.eup %3653  ;;  %3673 = vrcp.f32 %v2388_v43  ;;  %v2391_v37 = vadd.f32 1.0, %v3652_v27 }
 0x2c4   : > { %v3656_v55 = vpop.eup %3655  ;;  %3675 = vrcp.f32 %v2389_v14  ;;  %v2390_v1 = vadd.f32 1.0, %v3654_v46  ;;  %v5884_v14 = vld [vmem:[#allocation6_spill] sm:$0xff] }
 0x2c5   : > { %v3658_v7 = vpop.eup %3657  ;;  %3677 = vrcp.f32 %v2391_v37  ;;  %v2392_v26 = vadd.f32 1.0, %v3656_v55 }
 0x2c6   : > { %v3660_v13 = vpop.eup %3659  ;;  %3679 = vrcp.f32 %v2390_v1  ;;  %v2393_v28 = vadd.f32 1.0, %v3658_v7 }
 0x2c7   : > { %v3662_v18 = vpop.eup %3661  ;;  %3681 = vrcp.f32 %v2392_v26  ;;  %v2395_v3 = vadd.f32 1.0, %v3660_v13 }
 0x2c8   : > { %v3664_v47 = vpop.eup %3663  ;;  %3683 = vrcp.f32 %v2393_v28  ;;  %v2394_v56 = vadd.f32 1.0, %v3662_v18  ;;  %v5885_v18 = vlaneseq }
 0x2c9   : > { %v3666_v49 = vpop.eup %3665  ;;  %3685 = vrcp.f32 %v2395_v3  ;;  %v2396_v57 = vadd.f32 1.0, %v3664_v47 }
 0x2ca   : > { %v3668_v63 = vpop.eup %3667  ;;  %3687 = vrcp.f32 %v2394_v56  ;;  %v2576_v11 = vmul.f32 %v3666_v49, %v5519_v60  ;;  %vm2773_vm0 = vcmp.lt.s32.totalorder %v5885_v18, 512 }
 0x2cb   : > { %v3670_v61 = vpop.eup %3669  ;;  %v2577_v51 = vmul.f32 %v3668_v63, %v5540_v17  ;;  %3689 = vrcp.f32 %v2396_v57 }
 0x2cc   : > { %v3672_v45 = vpop.eup %3671  ;;  %v2579_v52 = vmul.f32 %v3670_v61, %v5543_v24 }
 0x2cd   : > { %v3674_v25 = vpop.eup %3673  ;;  %v3097_v19 = vpack.c.bf16 %v2577_v51, %v2573_v42  ;;  %v2578_v9 = vmul.f32 %v3672_v45, %v5546_v16 }
 0x2ce   : > { %v3676_v44 = vpop.eup %3675  ;;  %v3129_v54 = vpack.c.bf16 %v2579_v52, %v2575_v41  ;;  %v2580_v2 = vmul.f32 %v3674_v25, %v5550_v39 }
 0x2cf   : > { %v3678_v33 = vpop.eup %3677  ;;  %v3095_v17 = vpack.c.bf16 %v2578_v9, %v2574_v29  ;;  %v2581_v5 = vmul.f32 %v3676_v44, %v5554_v34 }
 0x2d0   : > { %v3680_v23 = vpop.eup %3679  ;;  %v3127_v10 = vpack.c.bf16 %v2580_v2, %v2576_v11  ;;  %v2583_v60 = vmul.f32 %v3678_v33, %v5557_v58  ;;  %v2589_v58 = vld [vmem:[%s5679_s9] sm:$0x1] }
 0x2d1   : > { %v3682_v31 = vpop.eup %3681  ;;  %3096 = vmatprep.subr.bf16.mxu0 %v3095_v17  ;;  %v2582_v8 = vmul.f32 %v3680_v23, %v5561_v38  ;;  %v3757_v38 = vmov 1966171168  }
 0x2d2   : > { %v3684_v20 = vpop.eup %3683  ;;  %3128 = vmatprep.subr.bf16.mxu1 %v3127_v10  ;;  %3098 = vmatpush1.bf16.msra.mxu0 %v3097_v19  ;;  %v2584_v0 = vmul.f32 %v3682_v31, %v5564_v35 }
 0x2d3   : > { %v3686_v24 = vpop.eup %3685  ;;  %v2585_v16 = vmul.f32 %v3684_v20, %v5570_v50  ;;  %3130 = vmatpush1.bf16.msra.mxu1 %v3129_v54 }
 0x2d4   : > { %v3688_v48 = vpop.eup %3687  ;;  %v2587_v39 = vmul.f32 %v3686_v24, %v5574_v32  ;;  %v2749_v32 = vunpack.c.l.s4 %v3757_v38 }
 0x2d5   : > { %v3690_v15 = vpop.eup %3689  ;;  %v3101_v12 = vpack.c.bf16 %v2585_v16, %v2581_v5  ;;  %v2586_v21 = vmul.f32 %v3688_v48, %v5578_v6  ;;  %v2594_v6 = vpop.permute.xlu0 %2593 }
 0x2d6   : > { %v3133_v62 = vpack.c.bf16 %v2587_v39, %v2583_v60  ;;  %v2588_v34 = vmul.f32 %v3690_v15, %v5585_v40  ;;  %v2750_v35 = vunpack.c.0.s8 %v2749_v32  ;;  %v2599_v22 = vrot.slane %v2594_v6, %v5883_v30 }
 0x2d7   : > { %v3099_v4 = vpack.c.bf16 %v2586_v21, %v2582_v8 }
 0x2d8   : > { %v3131_v50 = vpack.c.bf16 %v2588_v34, %v2584_v0  ;;  %v2753_v46 = vsub.s32 %v2750_v35, %v5884_v14 }
 0x2d9   : > { %3100 = vmatprep.subr.bf16.mxu0 %v3099_v4 }
 0x2da   : > { %3132 = vmatprep.subr.bf16.mxu1 %v3131_v50  ;;  %3102 = vmatpush1.bf16.msra.mxu0 %v3101_v12 }
 0x2db   : > { %3134 = vmatpush1.bf16.msra.mxu1 %v3133_v62 }
 0x2dd   : > { %2665 = vmatmul.mubr.f32.vlgmr.msra.gmra.mrb[32].mxu0 %v2589_v58 }
 0x2de   : > { %2736 = vmatmul.mubr.f32.vlgmr.msra.gmra.mrb[32].mxu1 %v2589_v58 }
 0x3b0   : > { %v2666_v40 = vpop.f32.mrb[32].mxu0 }
 0x3b1   : > { %v2667_v36 = vadd.f32 %v2666_v40, %v2599_v22  ;;  %v2737_v59 = vpop.f32.mrb[32].mxu1  ;;  %v2668_v53 = vpop.f32.mrb[33].mxu0 }
 0x3b2   : > { %v2738_v43 = vadd.f32 %v2737_v59, %v2599_v22  ;;  %v2669_v27 = vadd.f32 %v2668_v53, %v2599_v22  ;;  %v2739_v37 = vpop.f32.mrb[33].mxu1 }
 0x3b3   : > { %v2740_v55 = vadd.f32 %v2739_v37, %v2599_v22 }
 0x3b4   : > { %v2746_v1 = vcombine.low %v2667_v36, %v2669_v27 }
 0x3b5   : > { %v2747_v7 = vcombine.low %v2738_v43, %v2740_v55 }
 0x3b6   : > { %v2754_v26 = vrot.slane %v2746_v1, %v2753_v46 }
 0x3b7   : > { %v2761_v13 = vrot.slane %v2747_v7, %v2753_v46 }
 0x3b9   : > { %v2762_v28 = vcombine.low %v2754_v26, %v2761_v13 }
 0x3bb   : > { %v2769_v3 = vrot.slane %v2762_v28, %v2753_v46 }
 0x3bd   : > { %2775 = vst.msk [vmem:[%s408_s14] sm:$0xf] %vm2773_vm0, %v2769_v3 }
 0x3be   : > { %3704 = shalt.err (!%p3701_p3)
}
 0x3bf   : > { %s3705_s30 = scalar_lea.hbm %s5628_s18, 64  ;;  %s3709_s14 = scalar_lea.hbm %s5681_s11, 128 }
 0x3c0   : > { %p3706_p4 = scmp.ne.s32.totalorder %s5628_s18, %s3705_s30  ;;  %p3710_p9 = scmp.lt.u32.totalorder %s5628_s18, %s5681_s11 }
 0x3c1   : > { %p3711_p10 = scmp.lt.u32.totalorder %s3709_s14, %s3705_s30  ;;  %p3713_p12 = scmp.lt.u32.totalorder %s3705_s30, %s5628_s18 }
 0x3c2   : > { %p3707_p7 = pnand %p3706_p4, %p3860_p5 }
 0x3c3   : > { %p3712_p11 = por %p3711_p10, %p3710_p9 }
 0x3c4   : > { %p3708_p8 = pneg %p3707_p7 }
 0x3c5   : > { %p3714_p13 = por %p3713_p12, %p3712_p11 }
 0x3c7   : > { %p3715_p0 = pnand %p3714_p13, %p3708_p8 }
 0x3c9   : > { %3718 = shalt.err (!%p3715_p0)
}
 0x3ca   : > { %3135 = dma.vmem_to_hbm [thread:$0]  (%p3860_p5), %s5630_s15, 64, %s5628_s18, %s2777_s23  }
 0x3cb PF: > { %p3141_p1 = scmp.ge.s32.totalorder %s3753_s22, 2  ;;  %s2803_s3 = sand.u32 1, %s3741_s19  }
 0x3cc   : > { %s2804_s10 = scalar_lea.sflag [#allocation4], %s2803_s3 }
 0x3cd   : > { %p3138_p2 = pnand %p3141_p1, %p3864_p6 }
 0x3cf   : > { %3736 = dma.done.wait (!%p3138_p2), %s2804_s10, 64  }
 0x3d0   : > { %3738 = vsyncadd (!%p3138_p2), %s2804_s10, 4294967232  ;;  %p23_p3 = scmp.ge.s32.totalorder %s3847_s24, 4   ;;  %s5886_s19 = smov %s3745_s20 }
 0x3d1   : > { %s5887_s20 = smov %s3749_s21  ;;  %s5888_s21 = smov %s3858_s27 }
 0x3d2   : > { %s5889_s22 = smov %s3847_s24  ;;  %25 = sbr.rel (!%p23_p3) target bundleno = 6 (0x6), region = 105 }
 0x3d9   :  { %2809 = vsyncpa [#allocation4], 1 }
 0x3da   :  { %2811 = vsyncpa [#allocation4 + $0x1], 1 }

</bundles_post_ra>
